<compile_context>
chip_gen: v7x
topology: tpu7x:2x2x1
jax: 0.10.0
libtpu: 0.0.40
codegen_flags: <defaults>
</compile_context>

<pallas_src>
import functools

import jax
import jax.numpy as jnp
from jax.experimental import pallas as pl
from jax.experimental.pallas import tpu as pltpu


def _discriminator_kernel(t_ref, hpl_ref, hmi_ref, sc1_ref, sc2_ref):
    # t_ref:   (B, n_h)      resident (constant block index), streaming dtype
    # hpl_ref: (B, TN, n_h)  streamed tile, native dtype
    # hmi_ref: (B, TN, n_h)  streamed tile, native dtype
    # sc1/sc2: (B, TN)       f32, lane-dense over the node axis
    t = t_ref[...]
    B = t.shape[0]
    nt_dims = (((1,), (1,)), ((), ()))  # contract n_h of both operands (MXU "NT")
    for b in range(B):                  # B is tiny; static unroll
        # (B, TN) = t @ h[b]^T ; only row b is the wanted batch. The extra rows
        # are a negligible amount of spare MXU work that keeps the node axis in
        # lanes (no transpose / no XLU reduce on the streamed data).
        r1 = jax.lax.dot_general(t, hpl_ref[b], nt_dims,
                                 preferred_element_type=jnp.float32)
        r2 = jax.lax.dot_general(t, hmi_ref[b], nt_dims,
                                 preferred_element_type=jnp.float32)
        sc1_ref[b:b + 1, :] = r1[b:b + 1, :]
        sc2_ref[b:b + 1, :] = r2[b:b + 1, :]


def _round_down(x, m):
    return (x // m) * m


def _pick_tile_n(N, B, n_h, itemsize):
    """Node-tile size: as large as a comfortable share of VMEM allows (big per-step
    DMAs amortize the ~0.35us/step overhead), but keep >= 4 grid steps when N is
    large so the 'parallel' axis can be split across TensorCores (v7x)."""
    try:
        vmem_cap = int(pltpu.get_tpu_info().vmem_capacity_bytes)
    except Exception:
        vmem_cap = 64 * 1024 * 1024
    budget = min(vmem_cap // 3, 32 * 1024 * 1024)      # double-buffer budget w/ headroom
    n_h_pad = max(128, -(-n_h // 128) * 128)
    per_row = 4 * B * n_h_pad * itemsize + 256          # 2 inputs x 2 buffers (+ small outputs)
    tile = max(128, min(4096, _round_down(budget // max(per_row, 1), 128)))
    if N <= tile:
        if N >= 4 * 512:
            return max(512, _round_down(N // 4, 128))   # big-but-resident N: still split
        return N                                        # small N: one resident block
    if N >= 4 * 512:
        tile = min(tile, max(512, _round_down(pl.cdiv(N, 4), 128)))
    return tile


def discriminator_forward(c, h_pl, h_mi, W, bias,
                          s_bias1=None, s_bias2=None, tile_n=None):
    """Pallas equivalent of Discriminator.forward. Returns (B, 2N) logits (f32)."""
    B, N, n_h = h_pl.shape
    assert c.shape == (B, n_h), c.shape
    assert h_mi.shape == (B, N, n_h), h_mi.shape
    assert h_mi.dtype == h_pl.dtype, (h_mi.dtype, h_pl.dtype)
    assert W.shape == (n_h, n_h), W.shape

    # Hoisted tiny contraction (done once, outside the streamed loop):
    #   t[b, i] = sum_j W[i, j] * c[b, j]
    t = jax.lax.dot_general(
        c.astype(jnp.float32), W.astype(jnp.float32),
        dimension_numbers=(((1,), (1,)), ((), ())),
        preferred_element_type=jnp.float32)                     # (B, n_h)
    # Feed the MXU in the streaming dtype (bf16 in -> bf16 x bf16 with f32 acc).
    t = t.astype(h_pl.dtype)

    itemsize = jnp.dtype(h_pl.dtype).itemsize
    if tile_n is None:
        tn = _pick_tile_n(N, B, n_h, itemsize)
    else:
        tn = min(int(tile_n), N)
        if tn < N:
            tn = max(128, _round_down(tn, 128))  # lane-aligned output tiles
    grid = (pl.cdiv(N, tn),)

    # VMEM budget: exact double-buffered blocks + margin; no 32 MiB floor, 48 MiB cap
    # (leave headroom on v7x's 64 MiB physical VMEM per TC).
    n_h_pad = max(128, -(-n_h // 128) * 128)
    tn_sub = max(8, -(-tn // 8) * 8)
    tn_lane = max(128, -(-tn // 128) * 128)
    in_bytes = 2 * 2 * B * tn_sub * n_h_pad * itemsize          # h_pl + h_mi, 2 buffers
    out_bytes = 2 * 2 * 8 * tn_lane * 4                         # sc_1 + sc_2, 2 buffers
    t_bytes = 2 * 8 * n_h_pad * 4                               # resident t
    vmem_need = in_bytes + out_bytes + t_bytes
    vmem_limit = int(min(max(vmem_need + (8 << 20), 16 << 20), 48 << 20))

    flops = 2 * 2 * B * B * N * n_h                             # 2 scores x B small NT matmuls
    bytes_accessed = (2 * B * N * n_h * itemsize                # h_pl + h_mi streamed once
                      + B * n_h * itemsize                      # t
                      + 2 * B * N * 4)                          # sc_1, sc_2

    sc1, sc2 = pl.pallas_call(
        _discriminator_kernel,
        out_shape=(jax.ShapeDtypeStruct((B, N), jnp.float32),
                   jax.ShapeDtypeStruct((B, N), jnp.float32)),
        grid=grid,
        in_specs=[
            pl.BlockSpec((B, n_h), lambda n: (0, 0)),           # t: resident across steps
            pl.BlockSpec((B, tn, n_h), lambda n: (0, n, 0)),    # h_pl tile
            pl.BlockSpec((B, tn, n_h), lambda n: (0, n, 0)),    # h_mi tile
        ],
        out_specs=(
            pl.BlockSpec((B, tn), lambda n: (0, n)),            # sc_1 (lane-dense)
            pl.BlockSpec((B, tn), lambda n: (0, n)),            # sc_2 (lane-dense)
        ),
        compiler_params=pltpu.CompilerParams(
            dimension_semantics=("parallel",),                  # v7x: 2 TCs split N
            vmem_limit_bytes=vmem_limit),
        cost_estimate=pl.CostEstimate(flops=flops, transcendentals=0,
                                      bytes_accessed=bytes_accessed),
    )(t, h_pl, h_mi)

    # Epilogue on the tiny (B, N)/(B, 2N) results: bias, optional s_bias, concat.
    bias_f = jnp.asarray(bias, jnp.float32)
    sc1 = sc1 + bias_f
    sc2 = sc2 + bias_f
    if s_bias1 is not None:
        sc1 = sc1 + s_bias1
    if s_bias2 is not None:
        sc2 = sc2 + s_bias2
    return jnp.concatenate([sc1, sc2], axis=1)


if __name__ == "__main__":
    key = jax.random.PRNGKey(0)
    B, N, n_h = 2, 1024, 128
    k1, k2, k3, k4 = jax.random.split(key, 4)

    c = jax.random.normal(k1, (B, n_h), jnp.float32)
    h_pl = jax.random.normal(k2, (B, N, n_h), jnp.float32)
    h_mi = jax.random.normal(k3, (B, N, n_h), jnp.float32)

    # Deterministic init mirroring the module: xavier_uniform_ on the Bilinear
    # weight (1, n_h, n_h) -> fan_in = n_h * n_h, fan_out = n_h; bias = 0.
    fan_in, fan_out = n_h * n_h, n_h
    bound = (6.0 / (fan_in + fan_out)) ** 0.5
    W = jax.random.uniform(k4, (n_h, n_h), jnp.float32, -bound, bound)
    bias = jnp.zeros((), jnp.float32)

    # Pure-JAX reference.
    t_ref = c @ W.T
    ref1 = jnp.einsum("bni,bi->bn", h_pl, t_ref) + bias
    ref2 = jnp.einsum("bni,bi->bn", h_mi, t_ref) + bias
    ref = jnp.concatenate([ref1, ref2], axis=1)

    # 1) f32 inputs, auto tile (N fits one resident block).
    fwd = jax.jit(discriminator_forward)
    logits = jax.block_until_ready(fwd(c, h_pl, h_mi, W, bias))
    assert logits.shape == (B, 2 * N), logits.shape
    assert jnp.allclose(logits, ref, atol=5e-2, rtol=5e-2), "f32 mismatch vs reference"

    # 2) bf16 streams with explicit 256-row tiles -> grid (4,), exercising the
    #    software pipeline, plus the optional additive s_bias path.
    s_b1, s_b2 = jnp.float32(0.5), jnp.float32(-0.25)
    fwd_bf16 = jax.jit(functools.partial(discriminator_forward, tile_n=256))
    logits_bf16 = jax.block_until_ready(
        fwd_bf16(c, h_pl.astype(jnp.bfloat16), h_mi.astype(jnp.bfloat16), W, bias,
                 s_bias1=s_b1, s_bias2=s_b2))
    ref_b = jnp.concatenate([ref1 + s_b1, ref2 + s_b2], axis=1)
    assert logits_bf16.shape == (B, 2 * N)
    assert jnp.allclose(logits_bf16, ref_b, atol=1.5e-1, rtol=5e-2), \
        "bf16 mismatch vs reference"

    print("KERNEL_OK")
</pallas_src>

<mosaic_0001>
module attributes {stable_mosaic.version = 11 : i64} {
  func.func @_discriminator_kernel(%arg0: i32, %arg1: memref<2x128xf32, #tpu.memory_space<vmem>>, %arg2: memref<2x1024x128xf32, #tpu.memory_space<vmem>>, %arg3: memref<2x1024x128xf32, #tpu.memory_space<vmem>>, %arg4: memref<2x1024xf32, #tpu.memory_space<vmem>>, %arg5: memref<2x1024xf32, #tpu.memory_space<vmem>>) attributes {dimension_semantics = [#tpu.dimension_semantics<parallel>], iteration_bounds = array<i64: 1>, scalar_prefetch = 0 : i64, scratch_operands = 0 : i64, tpu.core_type = #tpu.core_type<tc>, window_params = [{pipeline_mode = #tpu.pipeline_mode<synchronous>, transform_indices = @transform_0, window_bounds = array<i64: 2, 128>}, {transform_indices = @transform_1, window_bounds = array<i64: 2, 1024, 128>}, {transform_indices = @transform_2, window_bounds = array<i64: 2, 1024, 128>}, {transform_indices = @transform_3, window_bounds = array<i64: 2, 1024>}, {transform_indices = @transform_4, window_bounds = array<i64: 2, 1024>}]} {
    %c0 = arith.constant 0 : index
    %c0_0 = arith.constant 0 : index
    %0 = vector.load %arg1[%c0, %c0_0] : memref<2x128xf32, #tpu.memory_space<vmem>>, vector<2x128xf32>
    %c0_1 = arith.constant 0 : index
    %c0_2 = arith.constant 0 : index
    %c0_3 = arith.constant 0 : index
    %1 = vector.load %arg2[%c0_1, %c0_2, %c0_3] : memref<2x1024x128xf32, #tpu.memory_space<vmem>>, vector<1x1024x128xf32>
    %2 = vector.shape_cast %1 : vector<1x1024x128xf32> to vector<1024x128xf32>
    %cst = arith.constant dense<0.000000e+00> : vector<2x1024xf32>
    %3 = tpu.matmul %0, %2, %cst {dimension_numbers = #tpu.dot_dimension_numbers<[1], [1], [0], [0], [0, 0, 1, 0], [], []>} : vector<2x128xf32>, vector<1024x128xf32>, vector<2x1024xf32> -> vector<2x1024xf32>
    %c0_4 = arith.constant 0 : index
    %c0_5 = arith.constant 0 : index
    %c0_6 = arith.constant 0 : index
    %4 = vector.load %arg3[%c0_4, %c0_5, %c0_6] : memref<2x1024x128xf32, #tpu.memory_space<vmem>>, vector<1x1024x128xf32>
    %5 = vector.shape_cast %4 : vector<1x1024x128xf32> to vector<1024x128xf32>
    %cst_7 = arith.constant dense<0.000000e+00> : vector<2x1024xf32>
    %6 = tpu.matmul %0, %5, %cst_7 {dimension_numbers = #tpu.dot_dimension_numbers<[1], [1], [0], [0], [0, 0, 1, 0], [], []>} : vector<2x128xf32>, vector<1024x128xf32>, vector<2x1024xf32> -> vector<2x1024xf32>
    %7 = vector.extract_strided_slice %3 {offsets = [0, 0], sizes = [1, 1024], strides = [1, 1]} : vector<2x1024xf32> to vector<1x1024xf32>
    %c0_8 = arith.constant 0 : index
    %c0_9 = arith.constant 0 : index
    %8 = vector.load %arg4[%c0_8, %c0_9] : memref<2x1024xf32, #tpu.memory_space<vmem>>, vector<1x1024xf32>
    tpu.vector_store %arg4[%c0_8, %c0_9], %7 {strides = array<i32>} : memref<2x1024xf32, #tpu.memory_space<vmem>>, vector<1x1024xf32>,
    %9 = vector.extract_strided_slice %6 {offsets = [0, 0], sizes = [1, 1024], strides = [1, 1]} : vector<2x1024xf32> to vector<1x1024xf32>
    %c0_10 = arith.constant 0 : index
    %c0_11 = arith.constant 0 : index
    %10 = vector.load %arg5[%c0_10, %c0_11] : memref<2x1024xf32, #tpu.memory_space<vmem>>, vector<1x1024xf32>
    tpu.vector_store %arg5[%c0_10, %c0_11], %9 {strides = array<i32>} : memref<2x1024xf32, #tpu.memory_space<vmem>>, vector<1x1024xf32>,
    %c1 = arith.constant 1 : index
    %c0_12 = arith.constant 0 : index
    %c0_13 = arith.constant 0 : index
    %11 = vector.load %arg2[%c1, %c0_12, %c0_13] : memref<2x1024x128xf32, #tpu.memory_space<vmem>>, vector<1x1024x128xf32>
    %12 = vector.shape_cast %11 : vector<1x1024x128xf32> to vector<1024x128xf32>
    %cst_14 = arith.constant dense<0.000000e+00> : vector<2x1024xf32>
    %13 = tpu.matmul %0, %12, %cst_14 {dimension_numbers = #tpu.dot_dimension_numbers<[1], [1], [0], [0], [0, 0, 1, 0], [], []>} : vector<2x128xf32>, vector<1024x128xf32>, vector<2x1024xf32> -> vector<2x1024xf32>
    %c1_15 = arith.constant 1 : index
    %c0_16 = arith.constant 0 : index
    %c0_17 = arith.constant 0 : index
    %14 = vector.load %arg3[%c1_15, %c0_16, %c0_17] : memref<2x1024x128xf32, #tpu.memory_space<vmem>>, vector<1x1024x128xf32>
    %15 = vector.shape_cast %14 : vector<1x1024x128xf32> to vector<1024x128xf32>
    %cst_18 = arith.constant dense<0.000000e+00> : vector<2x1024xf32>
    %16 = tpu.matmul %0, %15, %cst_18 {dimension_numbers = #tpu.dot_dimension_numbers<[1], [1], [0], [0], [0, 0, 1, 0], [], []>} : vector<2x128xf32>, vector<1024x128xf32>, vector<2x1024xf32> -> vector<2x1024xf32>
    %17 = vector.extract_strided_slice %13 {offsets = [1, 0], sizes = [1, 1024], strides = [1, 1]} : vector<2x1024xf32> to vector<1x1024xf32>
    %c1_19 = arith.constant 1 : index
    %c0_20 = arith.constant 0 : index
    %18 = vector.load %arg4[%c1_19, %c0_20] : memref<2x1024xf32, #tpu.memory_space<vmem>>, vector<1x1024xf32>
    tpu.vector_store %arg4[%c1_19, %c0_20], %17 {strides = array<i32>} : memref<2x1024xf32, #tpu.memory_space<vmem>>, vector<1x1024xf32>,
    %19 = vector.extract_strided_slice %16 {offsets = [1, 0], sizes = [1, 1024], strides = [1, 1]} : vector<2x1024xf32> to vector<1x1024xf32>
    %c1_21 = arith.constant 1 : index
    %c0_22 = arith.constant 0 : index
    %20 = vector.load %arg5[%c1_21, %c0_22] : memref<2x1024xf32, #tpu.memory_space<vmem>>, vector<1x1024xf32>
    tpu.vector_store %arg5[%c1_21, %c0_22], %19 {strides = array<i32>} : memref<2x1024xf32, #tpu.memory_space<vmem>>, vector<1x1024xf32>,
    return
  }
  func.func @transform_0(%arg0: i32) -> (i32, i32) {
    %c0_i32 = arith.constant 0 : i32
    %c0_i32_0 = arith.constant 0 : i32
    %c0_i32_1 = arith.constant 0 : i32
    return %c0_i32, %c0_i32_0 : i32, i32
  }
  func.func @transform_1(%arg0: i32) -> (i32, i32, i32) {
    %c0_i32 = arith.constant 0 : i32
    %c0_i32_0 = arith.constant 0 : i32
    %c0_i32_1 = arith.constant 0 : i32
    return %c0_i32, %arg0, %c0_i32_0 : i32, i32, i32
  }
  func.func @transform_2(%arg0: i32) -> (i32, i32, i32) {
    %c0_i32 = arith.constant 0 : i32
    %c0_i32_0 = arith.constant 0 : i32
    %c0_i32_1 = arith.constant 0 : i32
    return %c0_i32, %arg0, %c0_i32_0 : i32, i32, i32
  }
  func.func @transform_3(%arg0: i32) -> (i32, i32) {
    %c0_i32 = arith.constant 0 : i32
    %c0_i32_0 = arith.constant 0 : i32
    return %c0_i32, %arg0 : i32, i32
  }
  func.func @transform_4(%arg0: i32) -> (i32, i32) {
    %c0_i32 = arith.constant 0 : i32
    %c0_i32_0 = arith.constant 0 : i32
    return %c0_i32, %arg0 : i32, i32
  }
}

</mosaic_0001>

<bundles_post_ra>
// kernel: discriminator_forward.1
= control target key start
LH: loop header
LB: loop body
LE: loop exit
PB: predicated region body
PF: predicated region fallthrough
CT: control target
= control target key end

     0   :  { %10 = vsyncpa [#allocation3], 0  ;;  %s3207_s0 = inlined_call_operand.vmem [shape: f32[2,128], index: 0, kind: input, shape index: {}]   ;;  %s3208_s1 = inlined_call_operand.hbm [shape: f32[2,1024,128], index: 1, kind: input, shape index: {}]   ;;  %s3209_s2 = inlined_call_operand.hbm [shape: f32[2,1024,128], index: 2, kind: input, shape index: {}]   ;;  %s3210_s3 = inlined_call_operand.vmem [shape: f32[2,1024], index: 3, kind: output, shape index: {0}]   ;;  %s3211_s4 = inlined_call_operand.vmem [shape: f32[2,1024], index: 4, kind: output, shape index: {1}]  }
   0x1   :  { %11 = vsyncpa [#allocation5], 0  ;;  %s3055_s15 = smov [#allocation2]   ;;  %s3007_s19 = scalar_lea.hbm %s3208_s1, 32768 }
   0x2   :  { %s19_s16 = sshll.u32 %s3055_s15, 4  ;;  %p3008_p0 = scmp.ne.s32.totalorder %s3208_s1, %s3007_s19  ;;  %s20_s16 = int_to_ptr.vmem [resolvable:$true] %s19_s16 }
   0x3   :  { %p3011_p1 = scmp.lt.u32.totalorder %s3007_s19, %s3208_s1 }
   0x5   :  { %p3013_p2 = pnand %p3011_p1, %p3008_p0 }
   0x7   :  { %3016 = shalt.err (!%p3013_p2)
}
   0x8   :  { %s3017_s24 = scalar_lea.vmem %s20_s16, 32768  ;;  %p3022_p4 = scmp.lt.s32.totalorder %s20_s16, %s20_s16 }
   0x9   :  { %p3018_p3 = scmp.ne.s32.totalorder %s20_s16, %s3017_s24  ;;  %p3023_p5 = scmp.lt.s32.totalorder %s3017_s24, %s3017_s24 }
   0xb   :  { %p3024_p6 = por %p3023_p5, %p3022_p4 }
   0xd   :  { %p3025_p7 = pnand %p3024_p6, %p3018_p3 }
   0xf   :  { %3028 = shalt.err (!%p3025_p7)
}
  0x10   :  { %s3056_s25 = smov 128   ;;  %s3057_s26 = smov 8  }
  0x11   :  { %25 = dma.hbm_to_vmem [thread:$0]  %s3208_s1, 32768, %s20_s16, [#allocation3], %s3056_s25, %s3056_s25, %s3057_s26  }
  0x12   :  { %s3058_s29 = smov [#allocation4]   ;;  %s3029_s7 = scalar_lea.hbm %s3209_s2, 32768 }
  0x13   :  { %s31_s30 = sshll.u32 %s3058_s29, 4  ;;  %p3030_p8 = scmp.ne.s32.totalorder %s3209_s2, %s3029_s7  ;;  %s32_s30 = int_to_ptr.vmem [resolvable:$true] %s31_s30 }
  0x14   :  { %p3033_p9 = scmp.lt.u32.totalorder %s3029_s7, %s3209_s2 }
  0x16   :  { %p3035_p10 = pnand %p3033_p9, %p3030_p8 }
  0x18   :  { %3038 = shalt.err (!%p3035_p10)
}
  0x19   :  { %s3039_s12 = scalar_lea.vmem %s32_s30, 32768  ;;  %p3044_p12 = scmp.lt.s32.totalorder %s32_s30, %s32_s30 }
  0x1a   :  { %p3040_p11 = scmp.ne.s32.totalorder %s32_s30, %s3039_s12  ;;  %p3045_p13 = scmp.lt.s32.totalorder %s3039_s12, %s3039_s12 }
  0x1c   :  { %p3046_p0 = por %p3045_p13, %p3044_p12 }
  0x1e   :  { %p3047_p1 = pnand %p3046_p0, %p3040_p11 }
  0x20   :  { %3050 = shalt.err (!%p3047_p1)
}
  0x21   :  { %37 = dma.hbm_to_vmem [thread:$0]  %s3209_s2, 32768, %s32_s30, [#allocation5], %s3056_s25, %s3056_s25, %s3057_s26  }
  0x22   :  { %3051 = dma.done.wait [#allocation3], 32768  }
  0x23   :  { %3052 = vsyncadd [#allocation3], 4294934528 }
  0x24   :  { %3053 = dma.done.wait [#allocation5], 32768  }
  0x25   :  { %3054 = vsyncadd [#allocation5], 4294934528  ;;  %v61_v0 = vld [vmem:[#allocation2 + $0x80] sm:$0xff]  ;;  %v62_v1 = vld [vmem:[#allocation2 + $0x88] sm:$0xff] }
  0x26   :  { %v93_v2 = vld [vmem:[#allocation2 + $0x180] sm:$0xff]  ;;  %v2489_v3 = vpack.c.bf16 %v62_v1, %v61_v0  ;;  %v94_v4 = vld [vmem:[#allocation2 + $0x188] sm:$0xff]  ;;  %v63_v11 = vld [vmem:[#allocation2 + $0x90] sm:$0xff] }
  0x27   :  { %v45_v5 = vld [vmem:[#allocation2] sm:$0xff]  ;;  %v46_v6 = vld [vmem:[#allocation2 + $0x8] sm:$0xff]  ;;  %v2521_v7 = vpack.c.bf16 %v94_v4, %v93_v2  ;;  %v64_v13 = vld [vmem:[#allocation2 + $0x98] sm:$0xff] }
  0x28   :  { %v2491_v8 = vpack.c.bf16 %v46_v6, %v45_v5  ;;  %v77_v9 = vld [vmem:[#allocation2 + $0x100] sm:$0xff]  ;;  %v78_v10 = vld [vmem:[#allocation2 + $0x108] sm:$0xff]  ;;  %2490 = vmatprep.subr.bf16.mxu0 %v2489_v3  ;;  %v95_v14 = vld [vmem:[#allocation2 + $0x190] sm:$0xff]  ;;  %v2493_v16 = vpack.c.bf16 %v64_v13, %v63_v11 }
  0x29   :  { %v2523_v12 = vpack.c.bf16 %v78_v10, %v77_v9  ;;  %v96_v15 = vld [vmem:[#allocation2 + $0x198] sm:$0xff]  ;;  %2522 = vmatprep.subr.bf16.mxu1 %v2521_v7  ;;  %v47_v18 = vld [vmem:[#allocation2 + $0x10] sm:$0xff]  ;;  %v65_v22 = vld [vmem:[#allocation2 + $0xa0] sm:$0xff] }
  0x2a   :  { %2492 = vmatpush3.bf16.xpose.msra.mxu0 %v2491_v8  ;;  %v2525_v17 = vpack.c.bf16 %v96_v15, %v95_v14  ;;  %v48_v19 = vld [vmem:[#allocation2 + $0x18] sm:$0xff]  ;;  %v79_v20 = vld [vmem:[#allocation2 + $0x110] sm:$0xff]  ;;  %v66_v23 = vld [vmem:[#allocation2 + $0xa8] sm:$0xff] }
  0x2b   :  { %2524 = vmatpush3.bf16.xpose.msra.mxu1 %v2523_v12  ;;  %2494 = vmatprep.subr.bf16.mxu0 %v2493_v16  ;;  %v80_v21 = vld [vmem:[#allocation2 + $0x118] sm:$0xff]  ;;  %v97_v24 = vld [vmem:[#allocation2 + $0x1a0] sm:$0xff]  ;;  %v98_v25 = vld [vmem:[#allocation2 + $0x1a8] sm:$0xff]  ;;  %v2495_v26 = vpack.c.bf16 %v48_v19, %v47_v18  ;;  %v2497_v28 = vpack.c.bf16 %v66_v23, %v65_v22 }
  0x2c   :  { %2526 = vmatprep.subr.bf16.mxu1 %v2525_v17  ;;  %v2527_v27 = vpack.c.bf16 %v80_v21, %v79_v20  ;;  %v2529_v29 = vpack.c.bf16 %v98_v25, %v97_v24  ;;  %v49_v30 = vld [vmem:[#allocation2 + $0x20] sm:$0xff]  ;;  %v50_v31 = vld [vmem:[#allocation2 + $0x28] sm:$0xff]  ;;  %v67_v34 = vld [vmem:[#allocation2 + $0xb0] sm:$0xff] }
  0x2d   :  { %v81_v32 = vld [vmem:[#allocation2 + $0x120] sm:$0xff]  ;;  %v82_v33 = vld [vmem:[#allocation2 + $0x128] sm:$0xff]  ;;  %v68_v35 = vld [vmem:[#allocation2 + $0xb8] sm:$0xff]  ;;  %v2499_v38 = vpack.c.bf16 %v50_v31, %v49_v30 }
  0x2e   :  { %v99_v36 = vld [vmem:[#allocation2 + $0x1b0] sm:$0xff]  ;;  %v100_v37 = vld [vmem:[#allocation2 + $0x1b8] sm:$0xff]  ;;  %v2531_v39 = vpack.c.bf16 %v82_v33, %v81_v32  ;;  %v2501_v40 = vpack.c.bf16 %v68_v35, %v67_v34  ;;  %v3112_v45 = vld [vmem:[%s3207_s0] sm:$0x3] }
  0x2f   :  { %v2533_v41 = vpack.c.bf16 %v100_v37, %v99_v36  ;;  %v51_v42 = vld [vmem:[#allocation2 + $0x30] sm:$0xff]  ;;  %v52_v43 = vld [vmem:[#allocation2 + $0x38] sm:$0xff]  ;;  %v69_v47 = vld [vmem:[#allocation2 + $0xc0] sm:$0xff]  ;;  %1977 = vmatprep.mubr.f32.mxu0 %v3112_v45  ;;  %2011 = vmatprep.mubr.f32.mxu1 %v3112_v45 }
  0x30   :  { %v83_v44 = vld [vmem:[#allocation2 + $0x130] sm:$0xff]  ;;  %v84_v46 = vld [vmem:[#allocation2 + $0x138] sm:$0xff]  ;;  %v70_v48 = vld [vmem:[#allocation2 + $0xc8] sm:$0xff]  ;;  %v2503_v51 = vpack.c.bf16 %v52_v43, %v51_v42 }
  0x31   :  { %v101_v49 = vld [vmem:[#allocation2 + $0x1c0] sm:$0xff]  ;;  %v102_v50 = vld [vmem:[#allocation2 + $0x1c8] sm:$0xff]  ;;  %v2535_v52 = vpack.c.bf16 %v84_v46, %v83_v44  ;;  %v2505_v53 = vpack.c.bf16 %v70_v48, %v69_v47  ;;  %v71_v59 = vld [vmem:[#allocation2 + $0xd0] sm:$0xff] }
  0x32   :  { %2496 = vmatpush3.bf16.xpose.msra.mxu0 %v2495_v26  ;;  %v2537_v54 = vpack.c.bf16 %v102_v50, %v101_v49  ;;  %v53_v55 = vld [vmem:[#allocation2 + $0x40] sm:$0xff]  ;;  %v54_v56 = vld [vmem:[#allocation2 + $0x48] sm:$0xff]  ;;  %v72_v60 = vld [vmem:[#allocation2 + $0xd8] sm:$0xff] }
  0x33   :  { %2528 = vmatpush3.bf16.xpose.msra.mxu1 %v2527_v27  ;;  %2498 = vmatprep.subr.bf16.mxu0 %v2497_v28  ;;  %v85_v57 = vld [vmem:[#allocation2 + $0x140] sm:$0xff]  ;;  %v86_v58 = vld [vmem:[#allocation2 + $0x148] sm:$0xff]  ;;  %v103_v61 = vld [vmem:[#allocation2 + $0x1d0] sm:$0xff]  ;;  %v2507_v63 = vpack.c.bf16 %v54_v56, %v53_v55  ;;  %v2509_v1 = vpack.c.bf16 %v72_v60, %v71_v59 }
  0x34   :  { %2530 = vmatprep.subr.bf16.mxu1 %v2529_v29  ;;  %v104_v62 = vld [vmem:[#allocation2 + $0x1d8] sm:$0xff]  ;;  %v2539_v0 = vpack.c.bf16 %v86_v58, %v85_v57  ;;  %v55_v3 = vld [vmem:[#allocation2 + $0x50] sm:$0xff]  ;;  %v73_v7 = vld [vmem:[#allocation2 + $0xe0] sm:$0xff] }
  0x35   :  { %v2541_v2 = vpack.c.bf16 %v104_v62, %v103_v61  ;;  %v56_v4 = vld [vmem:[#allocation2 + $0x58] sm:$0xff]  ;;  %v87_v5 = vld [vmem:[#allocation2 + $0x150] sm:$0xff]  ;;  %v74_v8 = vld [vmem:[#allocation2 + $0xe8] sm:$0xff] }
  0x36   :  { %v88_v6 = vld [vmem:[#allocation2 + $0x158] sm:$0xff]  ;;  %v105_v9 = vld [vmem:[#allocation2 + $0x1e0] sm:$0xff]  ;;  %v106_v10 = vld [vmem:[#allocation2 + $0x1e8] sm:$0xff]  ;;  %v2511_v11 = vpack.c.bf16 %v56_v4, %v55_v3  ;;  %v2513_v13 = vpack.c.bf16 %v74_v8, %v73_v7 }
  0x37   :  { %v2543_v12 = vpack.c.bf16 %v88_v6, %v87_v5  ;;  %v2545_v14 = vpack.c.bf16 %v106_v10, %v105_v9  ;;  %v57_v15 = vld [vmem:[#allocation2 + $0x60] sm:$0xff]  ;;  %v58_v16 = vld [vmem:[#allocation2 + $0x68] sm:$0xff]  ;;  %v75_v19 = vld [vmem:[#allocation2 + $0xf0] sm:$0xff] }
  0x38   :  { %v89_v17 = vld [vmem:[#allocation2 + $0x160] sm:$0xff]  ;;  %v90_v18 = vld [vmem:[#allocation2 + $0x168] sm:$0xff]  ;;  %v76_v20 = vld [vmem:[#allocation2 + $0xf8] sm:$0xff]  ;;  %v2515_v23 = vpack.c.bf16 %v58_v16, %v57_v15 }
  0x39   :  { %v107_v21 = vld [vmem:[#allocation2 + $0x1f0] sm:$0xff]  ;;  %v108_v22 = vld [vmem:[#allocation2 + $0x1f8] sm:$0xff]  ;;  %v2547_v24 = vpack.c.bf16 %v90_v18, %v89_v17  ;;  %v2517_v25 = vpack.c.bf16 %v76_v20, %v75_v19  ;;  %v125_v31 = vld [vmem:[#allocation2 + $0x280] sm:$0xff] }
  0x3a   :  { %2500 = vmatpush3.bf16.xpose.msra.mxu0 %v2499_v38  ;;  %v2549_v26 = vpack.c.bf16 %v108_v22, %v107_v21  ;;  %v59_v27 = vld [vmem:[#allocation2 + $0x70] sm:$0xff]  ;;  %v60_v28 = vld [vmem:[#allocation2 + $0x78] sm:$0xff]  ;;  %v126_v32 = vld [vmem:[#allocation2 + $0x288] sm:$0xff] }
  0x3b   :  { %2532 = vmatpush3.bf16.xpose.msra.mxu1 %v2531_v39  ;;  %2502 = vmatprep.subr.bf16.mxu0 %v2501_v40  ;;  %v91_v29 = vld [vmem:[#allocation2 + $0x170] sm:$0xff]  ;;  %v92_v30 = vld [vmem:[#allocation2 + $0x178] sm:$0xff]  ;;  %v157_v33 = vld [vmem:[#allocation2 + $0x380] sm:$0xff]  ;;  %v2519_v35 = vpack.c.bf16 %v60_v28, %v59_v27  ;;  %v2553_v37 = vpack.c.bf16 %v126_v32, %v125_v31 }
  0x3c   :  { %2534 = vmatprep.subr.bf16.mxu1 %v2533_v41  ;;  %v158_v34 = vld [vmem:[#allocation2 + $0x388] sm:$0xff]  ;;  %v2551_v36 = vpack.c.bf16 %v92_v30, %v91_v29  ;;  %v109_v39 = vld [vmem:[#allocation2 + $0x200] sm:$0xff]  ;;  %v127_v43 = vld [vmem:[#allocation2 + $0x290] sm:$0xff] }
  0x3d   :  { %v2585_v38 = vpack.c.bf16 %v158_v34, %v157_v33  ;;  %v110_v40 = vld [vmem:[#allocation2 + $0x208] sm:$0xff]  ;;  %v141_v41 = vld [vmem:[#allocation2 + $0x300] sm:$0xff]  ;;  %v128_v44 = vld [vmem:[#allocation2 + $0x298] sm:$0xff] }
  0x3e   :  { %v142_v42 = vld [vmem:[#allocation2 + $0x308] sm:$0xff]  ;;  %v159_v46 = vld [vmem:[#allocation2 + $0x390] sm:$0xff]  ;;  %v160_v47 = vld [vmem:[#allocation2 + $0x398] sm:$0xff]  ;;  %v2555_v48 = vpack.c.bf16 %v110_v40, %v109_v39  ;;  %v2557_v50 = vpack.c.bf16 %v128_v44, %v127_v43 }
  0x3f   :  { %v2587_v49 = vpack.c.bf16 %v142_v42, %v141_v41  ;;  %v144_v55 = vld [vmem:[#allocation2 + $0x318] sm:$0xff]  ;;  %v129_v56 = vld [vmem:[#allocation2 + $0x2a0] sm:$0xff]  ;;  %v130_v57 = vld [vmem:[#allocation2 + $0x2a8] sm:$0xff] }
  0x40   :  { %v161_v58 = vld [vmem:[#allocation2 + $0x3a0] sm:$0xff]  ;;  %v162_v59 = vld [vmem:[#allocation2 + $0x3a8] sm:$0xff]  ;;  %v2561_v62 = vpack.c.bf16 %v130_v57, %v129_v56  ;;  %v131_v4 = vld [vmem:[#allocation2 + $0x2b0] sm:$0xff] }
  0x41   :  { %v146_v3 = vld [vmem:[#allocation2 + $0x328] sm:$0xff]  ;;  %v132_v5 = vld [vmem:[#allocation2 + $0x2b8] sm:$0xff]  ;;  %v163_v6 = vld [vmem:[#allocation2 + $0x3b0] sm:$0xff] }
  0x42   :  { %2504 = vmatpush3.bf16.xpose.msra.mxu0 %v2503_v51  ;;  %v2589_v51 = vpack.c.bf16 %v160_v47, %v159_v46  ;;  %v164_v7 = vld [vmem:[#allocation2 + $0x3b8] sm:$0xff]  ;;  %v2565_v10 = vpack.c.bf16 %v132_v5, %v131_v4  ;;  %v133_v16 = vld [vmem:[#allocation2 + $0x2c0] sm:$0xff]  ;;  %v134_v17 = vld [vmem:[#allocation2 + $0x2c8] sm:$0xff] }
  0x43   :  { %2536 = vmatpush3.bf16.xpose.msra.mxu1 %v2535_v52  ;;  %2506 = vmatprep.subr.bf16.mxu0 %v2505_v53  ;;  %v111_v52 = vld [vmem:[#allocation2 + $0x210] sm:$0xff]  ;;  %v112_v53 = vld [vmem:[#allocation2 + $0x218] sm:$0xff]  ;;  %v165_v18 = vld [vmem:[#allocation2 + $0x3c0] sm:$0xff]  ;;  %v2569_v22 = vpack.c.bf16 %v134_v17, %v133_v16 }
  0x44   :  { %2538 = vmatprep.subr.bf16.mxu1 %v2537_v54  ;;  %v143_v54 = vld [vmem:[#allocation2 + $0x310] sm:$0xff]  ;;  %v2559_v60 = vpack.c.bf16 %v112_v53, %v111_v52  ;;  %v148_v15 = vld [vmem:[#allocation2 + $0x338] sm:$0xff]  ;;  %v166_v19 = vld [vmem:[#allocation2 + $0x3c8] sm:$0xff] }
  0x45   :  { %v2591_v61 = vpack.c.bf16 %v144_v55, %v143_v54  ;;  %v150_v27 = vld [vmem:[#allocation2 + $0x348] sm:$0xff]  ;;  %v135_v28 = vld [vmem:[#allocation2 + $0x2d0] sm:$0xff]  ;;  %v136_v29 = vld [vmem:[#allocation2 + $0x2d8] sm:$0xff] }
  0x46   :  { %v167_v30 = vld [vmem:[#allocation2 + $0x3d0] sm:$0xff]  ;;  %v168_v31 = vld [vmem:[#allocation2 + $0x3d8] sm:$0xff]  ;;  %v2573_v34 = vpack.c.bf16 %v136_v29, %v135_v28  ;;  %v137_v40 = vld [vmem:[#allocation2 + $0x2e0] sm:$0xff] }
  0x47   :  { %v152_v39 = vld [vmem:[#allocation2 + $0x358] sm:$0xff]  ;;  %v138_v41 = vld [vmem:[#allocation2 + $0x2e8] sm:$0xff]  ;;  %v169_v42 = vld [vmem:[#allocation2 + $0x3e0] sm:$0xff] }
  0x48   :  { %v170_v43 = vld [vmem:[#allocation2 + $0x3e8] sm:$0xff]  ;;  %v2577_v47 = vpack.c.bf16 %v138_v41, %v137_v40  ;;  %v139_v53 = vld [vmem:[#allocation2 + $0x2f0] sm:$0xff]  ;;  %v140_v54 = vld [vmem:[#allocation2 + $0x2f8] sm:$0xff] }
  0x49   :  { %v154_v52 = vld [vmem:[#allocation2 + $0x368] sm:$0xff]  ;;  %v171_v55 = vld [vmem:[#allocation2 + $0x3f0] sm:$0xff]  ;;  %v172_v56 = vld [vmem:[#allocation2 + $0x3f8] sm:$0xff] }
  0x4a   :  { %2508 = vmatpush3.bf16.xpose.msra.mxu0 %v2507_v63  ;;  %v2593_v63 = vpack.c.bf16 %v162_v59, %v161_v58  ;;  %v2581_v59 = vpack.c.bf16 %v140_v54, %v139_v53  ;;  %v506_v4 = vld [vmem:[#allocation4 + $0x188] sm:$0xff]  ;;  %v508_v16 = vld [vmem:[#allocation4 + $0x198] sm:$0xff] }
  0x4b   :  { %2540 = vmatpush3.bf16.xpose.msra.mxu1 %v2539_v0  ;;  %2510 = vmatprep.subr.bf16.mxu0 %v2509_v1  ;;  %v113_v0 = vld [vmem:[#allocation2 + $0x220] sm:$0xff]  ;;  %v114_v1 = vld [vmem:[#allocation2 + $0x228] sm:$0xff]  ;;  %v512_v40 = vld [vmem:[#allocation4 + $0x1b8] sm:$0xff] }
  0x4c   :  { %2542 = vmatprep.subr.bf16.mxu1 %v2541_v2  ;;  %v145_v2 = vld [vmem:[#allocation2 + $0x320] sm:$0xff]  ;;  %v2563_v8 = vpack.c.bf16 %v114_v1, %v113_v0  ;;  %v156_v0 = vld [vmem:[#allocation2 + $0x378] sm:$0xff]  ;;  %v510_v28 = vld [vmem:[#allocation4 + $0x1a8] sm:$0xff] }
  0x4d   :  { %v2595_v9 = vpack.c.bf16 %v146_v3, %v145_v2  ;;  %v473_v1 = vld [vmem:[#allocation4 + $0x80] sm:$0xff]  ;;  %v474_v2 = vld [vmem:[#allocation4 + $0x88] sm:$0xff] }
  0x4e   :  { %v505_v3 = vld [vmem:[#allocation4 + $0x180] sm:$0xff]  ;;  %v514_v53 = vld [vmem:[#allocation4 + $0x1c8] sm:$0xff] }
  0x52   :  { %2512 = vmatpush3.bf16.xpose.msra.mxu0 %v2511_v11  ;;  %v2597_v11 = vpack.c.bf16 %v164_v7, %v163_v6  ;;  %v2617_v7 = vpack.c.bf16 %v474_v2, %v473_v1  ;;  %v516_v1 = vld [vmem:[#allocation4 + $0x1d8] sm:$0xff] }
  0x53   :  { %2544 = vmatpush3.bf16.xpose.msra.mxu1 %v2543_v12  ;;  %2514 = vmatprep.subr.bf16.mxu0 %v2513_v13  ;;  %v115_v12 = vld [vmem:[#allocation2 + $0x230] sm:$0xff]  ;;  %v116_v13 = vld [vmem:[#allocation2 + $0x238] sm:$0xff] }
  0x54   :  { %2546 = vmatprep.subr.bf16.mxu1 %v2545_v14  ;;  %v147_v14 = vld [vmem:[#allocation2 + $0x330] sm:$0xff]  ;;  %v2567_v20 = vpack.c.bf16 %v116_v13, %v115_v12  ;;  %v490_v12 = vld [vmem:[#allocation4 + $0x108] sm:$0xff] }
  0x55   :  { %v2599_v21 = vpack.c.bf16 %v148_v15, %v147_v14  ;;  %v475_v13 = vld [vmem:[#allocation4 + $0x90] sm:$0xff]  ;;  %v476_v14 = vld [vmem:[#allocation4 + $0x98] sm:$0xff] }
  0x56   :  { %v507_v15 = vld [vmem:[#allocation4 + $0x190] sm:$0xff] }
  0x5a   :  { %2516 = vmatpush3.bf16.xpose.msra.mxu0 %v2515_v23  ;;  %v2601_v23 = vpack.c.bf16 %v166_v19, %v165_v18  ;;  %v2621_v19 = vpack.c.bf16 %v476_v14, %v475_v13  ;;  %v518_v13 = vld [vmem:[#allocation4 + $0x1e8] sm:$0xff] }
  0x5b   :  { %2548 = vmatpush3.bf16.xpose.msra.mxu1 %v2547_v24  ;;  %2518 = vmatprep.subr.bf16.mxu0 %v2517_v25  ;;  %v117_v24 = vld [vmem:[#allocation2 + $0x240] sm:$0xff]  ;;  %v118_v25 = vld [vmem:[#allocation2 + $0x248] sm:$0xff] }
  0x5c   :  { %2550 = vmatprep.subr.bf16.mxu1 %v2549_v26  ;;  %v149_v26 = vld [vmem:[#allocation2 + $0x340] sm:$0xff]  ;;  %v2571_v32 = vpack.c.bf16 %v118_v25, %v117_v24  ;;  %v492_v24 = vld [vmem:[#allocation4 + $0x118] sm:$0xff] }
  0x5d   :  { %v2603_v33 = vpack.c.bf16 %v150_v27, %v149_v26  ;;  %v477_v25 = vld [vmem:[#allocation4 + $0xa0] sm:$0xff]  ;;  %v478_v26 = vld [vmem:[#allocation4 + $0xa8] sm:$0xff] }
  0x5e   :  { %v509_v27 = vld [vmem:[#allocation4 + $0x1a0] sm:$0xff] }
  0x62   :  { %2520 = vmatpush3.bf16.xpose.msra.mxu0 %v2519_v35  ;;  %v2605_v35 = vpack.c.bf16 %v168_v31, %v167_v30  ;;  %v2625_v31 = vpack.c.bf16 %v478_v26, %v477_v25  ;;  %v520_v25 = vld [vmem:[#allocation4 + $0x1f8] sm:$0xff] }
  0x63   :  { %2552 = vmatpush3.bf16.xpose.msra.mxu1 %v2551_v36  ;;  %2554 = vmatprep.subr.bf16.mxu0 %v2553_v37  ;;  %v119_v36 = vld [vmem:[#allocation2 + $0x250] sm:$0xff]  ;;  %v120_v37 = vld [vmem:[#allocation2 + $0x258] sm:$0xff] }
  0x64   :  { %2586 = vmatprep.subr.bf16.mxu1 %v2585_v38  ;;  %v151_v38 = vld [vmem:[#allocation2 + $0x350] sm:$0xff]  ;;  %v2575_v44 = vpack.c.bf16 %v120_v37, %v119_v36  ;;  %v494_v36 = vld [vmem:[#allocation4 + $0x128] sm:$0xff] }
  0x65   :  { %v2607_v46 = vpack.c.bf16 %v152_v39, %v151_v38  ;;  %v479_v37 = vld [vmem:[#allocation4 + $0xb0] sm:$0xff]  ;;  %v480_v38 = vld [vmem:[#allocation4 + $0xb8] sm:$0xff] }
  0x66   :  { %v511_v39 = vld [vmem:[#allocation4 + $0x1b0] sm:$0xff] }
  0x69   :  { %1978 = vmatmul.mubr.f32.vlgmr.msra.gmra.mrb[0].mxu0 %v3112_v45 }
  0x6a   :  { %2012 = vmatmul.mubr.f32.vlgmr.msra.gmra.mrb[0].mxu1 %v3112_v45  ;;  %2556 = vmatpush3.bf16.xpose.msra.mxu0 %v2555_v48  ;;  %v2609_v48 = vpack.c.bf16 %v170_v43, %v169_v42  ;;  %v2629_v43 = vpack.c.bf16 %v480_v38, %v479_v37  ;;  %v570_v37 = vld [vmem:[#allocation4 + $0x388] sm:$0xff] }
  0x6b   :  { %2588 = vmatpush3.bf16.xpose.msra.mxu1 %v2587_v49  ;;  %2558 = vmatprep.subr.bf16.mxu0 %v2557_v50  ;;  %v121_v49 = vld [vmem:[#allocation2 + $0x260] sm:$0xff]  ;;  %v122_v50 = vld [vmem:[#allocation2 + $0x268] sm:$0xff] }
  0x6c   :  { %2590 = vmatprep.subr.bf16.mxu1 %v2589_v51  ;;  %2045 = vmatprep.mubr.f32.mxu0 %v3112_v45  ;;  %v153_v51 = vld [vmem:[#allocation2 + $0x360] sm:$0xff]  ;;  %v2579_v57 = vpack.c.bf16 %v122_v50, %v121_v49  ;;  %v496_v49 = vld [vmem:[#allocation4 + $0x138] sm:$0xff] }
  0x6d   :  { %2079 = vmatprep.mubr.f32.mxu1 %v3112_v45  ;;  %v2611_v58 = vpack.c.bf16 %v154_v52, %v153_v51  ;;  %v481_v50 = vld [vmem:[#allocation4 + $0xc0] sm:$0xff]  ;;  %v482_v51 = vld [vmem:[#allocation4 + $0xc8] sm:$0xff] }
  0x6e   :  { %v513_v52 = vld [vmem:[#allocation4 + $0x1c0] sm:$0xff] }
  0x72   :  { %2560 = vmatpush3.bf16.xpose.msra.mxu0 %v2559_v60  ;;  %v2613_v60 = vpack.c.bf16 %v172_v56, %v171_v55  ;;  %v2633_v56 = vpack.c.bf16 %v482_v51, %v481_v50  ;;  %v572_v50 = vld [vmem:[#allocation4 + $0x398] sm:$0xff] }
  0x73   :  { %2592 = vmatpush3.bf16.xpose.msra.mxu1 %v2591_v61  ;;  %2562 = vmatprep.subr.bf16.mxu0 %v2561_v62  ;;  %v123_v61 = vld [vmem:[#allocation2 + $0x270] sm:$0xff]  ;;  %v124_v62 = vld [vmem:[#allocation2 + $0x278] sm:$0xff] }
  0x74   :  { %2594 = vmatprep.subr.bf16.mxu1 %v2593_v63  ;;  %v155_v63 = vld [vmem:[#allocation2 + $0x370] sm:$0xff]  ;;  %v2583_v5 = vpack.c.bf16 %v124_v62, %v123_v61  ;;  %v498_v61 = vld [vmem:[#allocation4 + $0x148] sm:$0xff] }
  0x75   :  { %v2615_v6 = vpack.c.bf16 %v156_v0, %v155_v63  ;;  %v483_v62 = vld [vmem:[#allocation4 + $0xd0] sm:$0xff]  ;;  %v484_v63 = vld [vmem:[#allocation4 + $0xd8] sm:$0xff] }
  0x76   :  { %v515_v0 = vld [vmem:[#allocation4 + $0x1d0] sm:$0xff] }
  0x7a   :  { %2564 = vmatpush3.bf16.xpose.msra.mxu0 %v2563_v8  ;;  %v2649_v8 = vpack.c.bf16 %v506_v4, %v505_v3  ;;  %v2637_v4 = vpack.c.bf16 %v484_v63, %v483_v62  ;;  %v574_v62 = vld [vmem:[#allocation4 + $0x3a8] sm:$0xff] }
  0x7b   :  { %2596 = vmatpush3.bf16.xpose.msra.mxu1 %v2595_v9  ;;  %2566 = vmatprep.subr.bf16.mxu0 %v2565_v10  ;;  %v457_v9 = vld [vmem:[#allocation4] sm:$0xff]  ;;  %v458_v10 = vld [vmem:[#allocation4 + $0x8] sm:$0xff] }
  0x7c   :  { %2598 = vmatprep.subr.bf16.mxu1 %v2597_v11  ;;  %v489_v11 = vld [vmem:[#allocation4 + $0x100] sm:$0xff]  ;;  %v2619_v17 = vpack.c.bf16 %v458_v10, %v457_v9  ;;  %v500_v9 = vld [vmem:[#allocation4 + $0x158] sm:$0xff] }
  0x7d   :  { %v2651_v18 = vpack.c.bf16 %v490_v12, %v489_v11  ;;  %v485_v10 = vld [vmem:[#allocation4 + $0xe0] sm:$0xff]  ;;  %v486_v11 = vld [vmem:[#allocation4 + $0xe8] sm:$0xff] }
  0x7e   :  { %v517_v12 = vld [vmem:[#allocation4 + $0x1e0] sm:$0xff] }
  0x82   :  { %2568 = vmatpush3.bf16.xpose.msra.mxu0 %v2567_v20  ;;  %v2653_v20 = vpack.c.bf16 %v508_v16, %v507_v15  ;;  %v2641_v16 = vpack.c.bf16 %v486_v11, %v485_v10  ;;  %v576_v10 = vld [vmem:[#allocation4 + $0x3b8] sm:$0xff] }
  0x83   :  { %2600 = vmatpush3.bf16.xpose.msra.mxu1 %v2599_v21  ;;  %2570 = vmatprep.subr.bf16.mxu0 %v2569_v22  ;;  %v459_v21 = vld [vmem:[#allocation4 + $0x10] sm:$0xff]  ;;  %v460_v22 = vld [vmem:[#allocation4 + $0x18] sm:$0xff] }
  0x84   :  { %2602 = vmatprep.subr.bf16.mxu1 %v2601_v23  ;;  %v491_v23 = vld [vmem:[#allocation4 + $0x110] sm:$0xff]  ;;  %v2623_v29 = vpack.c.bf16 %v460_v22, %v459_v21  ;;  %v502_v21 = vld [vmem:[#allocation4 + $0x168] sm:$0xff] }
  0x85   :  { %v2655_v30 = vpack.c.bf16 %v492_v24, %v491_v23  ;;  %v487_v22 = vld [vmem:[#allocation4 + $0xf0] sm:$0xff]  ;;  %v488_v23 = vld [vmem:[#allocation4 + $0xf8] sm:$0xff] }
  0x86   :  { %v519_v24 = vld [vmem:[#allocation4 + $0x1f0] sm:$0xff] }
  0x8a   :  { %2572 = vmatpush3.bf16.xpose.msra.mxu0 %v2571_v32  ;;  %v2657_v32 = vpack.c.bf16 %v510_v28, %v509_v27  ;;  %v2645_v28 = vpack.c.bf16 %v488_v23, %v487_v22  ;;  %v578_v22 = vld [vmem:[#allocation4 + $0x3c8] sm:$0xff] }
  0x8b   :  { %2604 = vmatpush3.bf16.xpose.msra.mxu1 %v2603_v33  ;;  %2574 = vmatprep.subr.bf16.mxu0 %v2573_v34  ;;  %v461_v33 = vld [vmem:[#allocation4 + $0x20] sm:$0xff]  ;;  %v462_v34 = vld [vmem:[#allocation4 + $0x28] sm:$0xff] }
  0x8c   :  { %2606 = vmatprep.subr.bf16.mxu1 %v2605_v35  ;;  %v493_v35 = vld [vmem:[#allocation4 + $0x120] sm:$0xff]  ;;  %v2627_v41 = vpack.c.bf16 %v462_v34, %v461_v33  ;;  %v504_v33 = vld [vmem:[#allocation4 + $0x178] sm:$0xff] }
  0x8d   :  { %v2659_v42 = vpack.c.bf16 %v494_v36, %v493_v35  ;;  %v537_v34 = vld [vmem:[#allocation4 + $0x280] sm:$0xff]  ;;  %v538_v35 = vld [vmem:[#allocation4 + $0x288] sm:$0xff] }
  0x8e   :  { %v569_v36 = vld [vmem:[#allocation4 + $0x380] sm:$0xff] }
  0x92   :  { %2576 = vmatpush3.bf16.xpose.msra.mxu0 %v2575_v44  ;;  %v2661_v44 = vpack.c.bf16 %v512_v40, %v511_v39  ;;  %v2681_v40 = vpack.c.bf16 %v538_v35, %v537_v34  ;;  %v580_v34 = vld [vmem:[#allocation4 + $0x3d8] sm:$0xff] }
  0x93   :  { %2608 = vmatpush3.bf16.xpose.msra.mxu1 %v2607_v46  ;;  %2578 = vmatprep.subr.bf16.mxu0 %v2577_v47  ;;  %v463_v46 = vld [vmem:[#allocation4 + $0x30] sm:$0xff]  ;;  %v464_v47 = vld [vmem:[#allocation4 + $0x38] sm:$0xff] }
  0x94   :  { %2610 = vmatprep.subr.bf16.mxu1 %v2609_v48  ;;  %v495_v48 = vld [vmem:[#allocation4 + $0x130] sm:$0xff]  ;;  %v2631_v54 = vpack.c.bf16 %v464_v47, %v463_v46  ;;  %v554_v46 = vld [vmem:[#allocation4 + $0x308] sm:$0xff] }
  0x95   :  { %v2663_v55 = vpack.c.bf16 %v496_v49, %v495_v48  ;;  %v539_v47 = vld [vmem:[#allocation4 + $0x290] sm:$0xff]  ;;  %v540_v48 = vld [vmem:[#allocation4 + $0x298] sm:$0xff] }
  0x96   :  { %v571_v49 = vld [vmem:[#allocation4 + $0x390] sm:$0xff] }
  0x9a   :  { %2580 = vmatpush3.bf16.xpose.msra.mxu0 %v2579_v57  ;;  %v2665_v57 = vpack.c.bf16 %v514_v53, %v513_v52  ;;  %v2685_v53 = vpack.c.bf16 %v540_v48, %v539_v47  ;;  %v582_v47 = vld [vmem:[#allocation4 + $0x3e8] sm:$0xff] }
  0x9b   :  { %2612 = vmatpush3.bf16.xpose.msra.mxu1 %v2611_v58  ;;  %2582 = vmatprep.subr.bf16.mxu0 %v2581_v59  ;;  %v465_v58 = vld [vmem:[#allocation4 + $0x40] sm:$0xff]  ;;  %v466_v59 = vld [vmem:[#allocation4 + $0x48] sm:$0xff] }
  0x9c   :  { %2614 = vmatprep.subr.bf16.mxu1 %v2613_v60  ;;  %v497_v60 = vld [vmem:[#allocation4 + $0x140] sm:$0xff]  ;;  %v2635_v2 = vpack.c.bf16 %v466_v59, %v465_v58  ;;  %v556_v58 = vld [vmem:[#allocation4 + $0x318] sm:$0xff] }
  0x9d   :  { %v2667_v3 = vpack.c.bf16 %v498_v61, %v497_v60  ;;  %v541_v59 = vld [vmem:[#allocation4 + $0x2a0] sm:$0xff]  ;;  %v542_v60 = vld [vmem:[#allocation4 + $0x2a8] sm:$0xff] }
  0x9e   :  { %v573_v61 = vld [vmem:[#allocation4 + $0x3a0] sm:$0xff] }
  0xa2   :  { %2584 = vmatpush3.bf16.xpose.msra.mxu0 %v2583_v5  ;;  %v2669_v5 = vpack.c.bf16 %v516_v1, %v515_v0  ;;  %v2689_v1 = vpack.c.bf16 %v542_v60, %v541_v59  ;;  %v584_v59 = vld [vmem:[#allocation4 + $0x3f8] sm:$0xff] }
  0xa3   :  { %2616 = vmatpush3.bf16.xpose.msra.mxu1 %v2615_v6  ;;  %2618 = vmatprep.subr.bf16.mxu0 %v2617_v7  ;;  %v467_v6 = vld [vmem:[#allocation4 + $0x50] sm:$0xff]  ;;  %v468_v7 = vld [vmem:[#allocation4 + $0x58] sm:$0xff] }
  0xa4   :  { %2650 = vmatprep.subr.bf16.mxu1 %v2649_v8  ;;  %v499_v8 = vld [vmem:[#allocation4 + $0x150] sm:$0xff]  ;;  %v2639_v14 = vpack.c.bf16 %v468_v7, %v467_v6  ;;  %v558_v6 = vld [vmem:[#allocation4 + $0x328] sm:$0xff] }
  0xa5   :  { %v2671_v15 = vpack.c.bf16 %v500_v9, %v499_v8  ;;  %v543_v7 = vld [vmem:[#allocation4 + $0x2b0] sm:$0xff]  ;;  %v544_v8 = vld [vmem:[#allocation4 + $0x2b8] sm:$0xff] }
  0xa6   :  { %v575_v9 = vld [vmem:[#allocation4 + $0x3b0] sm:$0xff] }
  0xa9   :  { %2046 = vmatmul.mubr.f32.vlgmr.msra.gmra.mrb[2].mxu0 %v3112_v45 }
  0xaa   :  { %2080 = vmatmul.mubr.f32.vlgmr.msra.gmra.mrb[2].mxu1 %v3112_v45  ;;  %2620 = vmatpush3.bf16.xpose.msra.mxu0 %v2619_v17  ;;  %v2673_v17 = vpack.c.bf16 %v518_v13, %v517_v12  ;;  %v2693_v13 = vpack.c.bf16 %v544_v8, %v543_v7  ;;  %v1037_v7 = vld [vmem:[#allocation2 + $0x588] sm:$0xff] }
  0xab   :  { %2652 = vmatpush3.bf16.xpose.msra.mxu1 %v2651_v18  ;;  %2622 = vmatprep.subr.bf16.mxu0 %v2621_v19  ;;  %v469_v18 = vld [vmem:[#allocation4 + $0x60] sm:$0xff]  ;;  %v470_v19 = vld [vmem:[#allocation4 + $0x68] sm:$0xff] }
  0xac   :  { %2654 = vmatprep.subr.bf16.mxu1 %v2653_v20  ;;  %2113 = vmatprep.mubr.f32.mxu0 %v3112_v45  ;;  %v501_v20 = vld [vmem:[#allocation4 + $0x160] sm:$0xff]  ;;  %v2643_v26 = vpack.c.bf16 %v470_v19, %v469_v18  ;;  %v560_v18 = vld [vmem:[#allocation4 + $0x338] sm:$0xff] }
  0xad   :  { %2147 = vmatprep.mubr.f32.mxu1 %v3112_v45  ;;  %v2675_v27 = vpack.c.bf16 %v502_v21, %v501_v20  ;;  %v545_v19 = vld [vmem:[#allocation4 + $0x2c0] sm:$0xff]  ;;  %v546_v20 = vld [vmem:[#allocation4 + $0x2c8] sm:$0xff] }
  0xae   :  { %v577_v21 = vld [vmem:[#allocation4 + $0x3c0] sm:$0xff] }
  0xb2   :  { %2624 = vmatpush3.bf16.xpose.msra.mxu0 %v2623_v29  ;;  %v2677_v29 = vpack.c.bf16 %v520_v25, %v519_v24  ;;  %v2697_v25 = vpack.c.bf16 %v546_v20, %v545_v19  ;;  %v1039_v19 = vld [vmem:[#allocation2 + $0x598] sm:$0xff] }
  0xb3   :  { %2656 = vmatpush3.bf16.xpose.msra.mxu1 %v2655_v30  ;;  %2626 = vmatprep.subr.bf16.mxu0 %v2625_v31  ;;  %v471_v30 = vld [vmem:[#allocation4 + $0x70] sm:$0xff]  ;;  %v472_v31 = vld [vmem:[#allocation4 + $0x78] sm:$0xff] }
  0xb4   :  { %2658 = vmatprep.subr.bf16.mxu1 %v2657_v32  ;;  %v503_v32 = vld [vmem:[#allocation4 + $0x170] sm:$0xff]  ;;  %v2647_v38 = vpack.c.bf16 %v472_v31, %v471_v30  ;;  %v562_v30 = vld [vmem:[#allocation4 + $0x348] sm:$0xff] }
  0xb5   :  { %v2679_v39 = vpack.c.bf16 %v504_v33, %v503_v32  ;;  %v547_v31 = vld [vmem:[#allocation4 + $0x2d0] sm:$0xff]  ;;  %v548_v32 = vld [vmem:[#allocation4 + $0x2d8] sm:$0xff] }
  0xb6   :  { %v579_v33 = vld [vmem:[#allocation4 + $0x3d0] sm:$0xff] }
  0xba   :  { %2628 = vmatpush3.bf16.xpose.msra.mxu0 %v2627_v41  ;;  %v2713_v41 = vpack.c.bf16 %v570_v37, %v569_v36  ;;  %v2701_v37 = vpack.c.bf16 %v548_v32, %v547_v31  ;;  %v1041_v31 = vld [vmem:[#allocation2 + $0x5a8] sm:$0xff] }
  0xbb   :  { %2660 = vmatpush3.bf16.xpose.msra.mxu1 %v2659_v42  ;;  %2630 = vmatprep.subr.bf16.mxu0 %v2629_v43  ;;  %v521_v42 = vld [vmem:[#allocation4 + $0x200] sm:$0xff]  ;;  %v522_v43 = vld [vmem:[#allocation4 + $0x208] sm:$0xff] }
  0xbc   :  { %2662 = vmatprep.subr.bf16.mxu1 %v2661_v44  ;;  %v553_v44 = vld [vmem:[#allocation4 + $0x300] sm:$0xff]  ;;  %v2683_v51 = vpack.c.bf16 %v522_v43, %v521_v42  ;;  %v564_v42 = vld [vmem:[#allocation4 + $0x358] sm:$0xff] }
  0xbd   :  { %v2715_v52 = vpack.c.bf16 %v554_v46, %v553_v44  ;;  %v549_v43 = vld [vmem:[#allocation4 + $0x2e0] sm:$0xff]  ;;  %v550_v44 = vld [vmem:[#allocation4 + $0x2e8] sm:$0xff] }
  0xbe   :  { %v581_v46 = vld [vmem:[#allocation4 + $0x3e0] sm:$0xff] }
  0xc2   :  { %2632 = vmatpush3.bf16.xpose.msra.mxu0 %v2631_v54  ;;  %v2717_v54 = vpack.c.bf16 %v572_v50, %v571_v49  ;;  %v2705_v50 = vpack.c.bf16 %v550_v44, %v549_v43  ;;  %v1010_v43 = vld [vmem:[#allocation2 + $0x4b0] sm:$0xff]  ;;  %v1011_v44 = vld [vmem:[#allocation2 + $0x4b8] sm:$0xff] }
  0xc3   :  { %2664 = vmatpush3.bf16.xpose.msra.mxu1 %v2663_v55  ;;  %2634 = vmatprep.subr.bf16.mxu0 %v2633_v56  ;;  %v523_v55 = vld [vmem:[#allocation4 + $0x210] sm:$0xff]  ;;  %v524_v56 = vld [vmem:[#allocation4 + $0x218] sm:$0xff] }
  0xc4   :  { %2666 = vmatprep.subr.bf16.mxu1 %v2665_v57  ;;  %v555_v57 = vld [vmem:[#allocation4 + $0x310] sm:$0xff]  ;;  %v2687_v63 = vpack.c.bf16 %v524_v56, %v523_v55  ;;  %v566_v55 = vld [vmem:[#allocation4 + $0x368] sm:$0xff] }
  0xc5   :  { %v2719_v0 = vpack.c.bf16 %v556_v58, %v555_v57  ;;  %v551_v56 = vld [vmem:[#allocation4 + $0x2f0] sm:$0xff]  ;;  %v552_v57 = vld [vmem:[#allocation4 + $0x2f8] sm:$0xff] }
  0xc6   :  { %v583_v58 = vld [vmem:[#allocation4 + $0x3f0] sm:$0xff] }
  0xca   :  { %2636 = vmatpush3.bf16.xpose.msra.mxu0 %v2635_v2  ;;  %v2721_v2 = vpack.c.bf16 %v574_v62, %v573_v61  ;;  %v2709_v62 = vpack.c.bf16 %v552_v57, %v551_v56 }
  0xcb   :  { %2668 = vmatpush3.bf16.xpose.msra.mxu1 %v2667_v3  ;;  %2638 = vmatprep.subr.bf16.mxu0 %v2637_v4  ;;  %v525_v3 = vld [vmem:[#allocation4 + $0x220] sm:$0xff]  ;;  %v526_v4 = vld [vmem:[#allocation4 + $0x228] sm:$0xff] }
  0xcc   :  { %2670 = vmatprep.subr.bf16.mxu1 %v2669_v5  ;;  %v557_v5 = vld [vmem:[#allocation4 + $0x320] sm:$0xff]  ;;  %v2691_v11 = vpack.c.bf16 %v526_v4, %v525_v3  ;;  %v568_v3 = vld [vmem:[#allocation4 + $0x378] sm:$0xff] }
  0xcd   :  { %v2723_v12 = vpack.c.bf16 %v558_v6, %v557_v5  ;;  %v1004_v4 = vld [vmem:[#allocation2 + $0x480] sm:$0xff]  ;;  %v1005_v5 = vld [vmem:[#allocation2 + $0x488] sm:$0xff] }
  0xce   :  { %v1036_v6 = vld [vmem:[#allocation2 + $0x580] sm:$0xff] }
  0xd2   :  { %2640 = vmatpush3.bf16.xpose.msra.mxu0 %v2639_v14  ;;  %v2725_v14 = vpack.c.bf16 %v576_v10, %v575_v9  ;;  %v2745_v10 = vpack.c.bf16 %v1005_v5, %v1004_v4 }
  0xd3   :  { %2672 = vmatpush3.bf16.xpose.msra.mxu1 %v2671_v15  ;;  %2642 = vmatprep.subr.bf16.mxu0 %v2641_v16  ;;  %v527_v15 = vld [vmem:[#allocation4 + $0x230] sm:$0xff]  ;;  %v528_v16 = vld [vmem:[#allocation4 + $0x238] sm:$0xff] }
  0xd4   :  { %2674 = vmatprep.subr.bf16.mxu1 %v2673_v17  ;;  %v559_v17 = vld [vmem:[#allocation4 + $0x330] sm:$0xff]  ;;  %v2695_v23 = vpack.c.bf16 %v528_v16, %v527_v15  ;;  %v1021_v15 = vld [vmem:[#allocation2 + $0x508] sm:$0xff] }
  0xd5   :  { %v2727_v24 = vpack.c.bf16 %v560_v18, %v559_v17  ;;  %v1006_v16 = vld [vmem:[#allocation2 + $0x490] sm:$0xff]  ;;  %v1007_v17 = vld [vmem:[#allocation2 + $0x498] sm:$0xff] }
  0xd6   :  { %v1038_v18 = vld [vmem:[#allocation2 + $0x590] sm:$0xff] }
  0xda   :  { %2644 = vmatpush3.bf16.xpose.msra.mxu0 %v2643_v26  ;;  %v2729_v26 = vpack.c.bf16 %v578_v22, %v577_v21  ;;  %v2749_v22 = vpack.c.bf16 %v1007_v17, %v1006_v16  ;;  %v1015_v16 = vld [vmem:[#allocation2 + $0x4d8] sm:$0xff]  ;;  %v1046_v17 = vld [vmem:[#allocation2 + $0x5d0] sm:$0xff] }
  0xdb   :  { %2676 = vmatpush3.bf16.xpose.msra.mxu1 %v2675_v27  ;;  %2646 = vmatprep.subr.bf16.mxu0 %v2645_v28  ;;  %v529_v27 = vld [vmem:[#allocation4 + $0x240] sm:$0xff]  ;;  %v530_v28 = vld [vmem:[#allocation4 + $0x248] sm:$0xff] }
  0xdc   :  { %2678 = vmatprep.subr.bf16.mxu1 %v2677_v29  ;;  %v561_v29 = vld [vmem:[#allocation4 + $0x340] sm:$0xff]  ;;  %v2699_v35 = vpack.c.bf16 %v530_v28, %v529_v27  ;;  %v1023_v27 = vld [vmem:[#allocation2 + $0x518] sm:$0xff] }
  0xdd   :  { %v2731_v36 = vpack.c.bf16 %v562_v30, %v561_v29  ;;  %v1008_v28 = vld [vmem:[#allocation2 + $0x4a0] sm:$0xff]  ;;  %v1009_v29 = vld [vmem:[#allocation2 + $0x4a8] sm:$0xff] }
  0xde   :  { %v1040_v30 = vld [vmem:[#allocation2 + $0x5a0] sm:$0xff] }
  0xe2   :  { %2648 = vmatpush3.bf16.xpose.msra.mxu0 %v2647_v38  ;;  %v2733_v38 = vpack.c.bf16 %v580_v34, %v579_v33  ;;  %v2753_v34 = vpack.c.bf16 %v1009_v29, %v1008_v28  ;;  %v1017_v28 = vld [vmem:[#allocation2 + $0x4e8] sm:$0xff]  ;;  %v1048_v29 = vld [vmem:[#allocation2 + $0x5e0] sm:$0xff] }
  0xe3   :  { %2680 = vmatpush3.bf16.xpose.msra.mxu1 %v2679_v39  ;;  %2682 = vmatprep.subr.bf16.mxu0 %v2681_v40  ;;  %v531_v39 = vld [vmem:[#allocation4 + $0x250] sm:$0xff]  ;;  %v532_v40 = vld [vmem:[#allocation4 + $0x258] sm:$0xff] }
  0xe4   :  { %2714 = vmatprep.subr.bf16.mxu1 %v2713_v41  ;;  %v563_v41 = vld [vmem:[#allocation4 + $0x350] sm:$0xff]  ;;  %v2703_v48 = vpack.c.bf16 %v532_v40, %v531_v39  ;;  %v1025_v39 = vld [vmem:[#allocation2 + $0x528] sm:$0xff]  ;;  %v3059_v40 = vmov 1966171168  }
  0xe5   :  { %v2735_v49 = vpack.c.bf16 %v564_v42, %v563_v41  ;;  %v882_v41 = vunpack.c.l.s4 %v3059_v40  ;;  %v884_v42 = vlaneseq  ;;  %v1019_v40 = vld [vmem:[#allocation2 + $0x4f8] sm:$0xff] }
  0xe9   :  { %2114 = vmatmul.mubr.f32.vlgmr.msra.gmra.mrb[4].mxu0 %v3112_v45 }
  0xea   :  { %2148 = vmatmul.mubr.f32.vlgmr.msra.gmra.mrb[4].mxu1 %v3112_v45  ;;  %2684 = vmatpush3.bf16.xpose.msra.mxu0 %v2683_v51  ;;  %v2737_v51 = vpack.c.bf16 %v582_v47, %v581_v46  ;;  %v1042_v46 = vld [vmem:[#allocation2 + $0x5b0] sm:$0xff]  ;;  %v1043_v47 = vld [vmem:[#allocation2 + $0x5b8] sm:$0xff] }
  0xeb   :  { %2716 = vmatpush3.bf16.xpose.msra.mxu1 %v2715_v52  ;;  %2686 = vmatprep.subr.bf16.mxu0 %v2685_v53  ;;  %v533_v52 = vld [vmem:[#allocation4 + $0x260] sm:$0xff]  ;;  %v534_v53 = vld [vmem:[#allocation4 + $0x268] sm:$0xff] }
  0xec   :  { %2718 = vmatprep.subr.bf16.mxu1 %v2717_v54  ;;  %2181 = vmatprep.mubr.f32.mxu0 %v3112_v45  ;;  %v565_v54 = vld [vmem:[#allocation4 + $0x360] sm:$0xff]  ;;  %v2707_v60 = vpack.c.bf16 %v534_v53, %v533_v52  ;;  %v2789_v52 = vpack.c.bf16 %v1043_v47, %v1042_v46  ;;  %v994_v53 = vld [vmem:[#allocation2 + $0x430] sm:$0xff] }
  0xed   :  { %2215 = vmatprep.mubr.f32.mxu1 %v3112_v45  ;;  %v2739_v61 = vpack.c.bf16 %v566_v55, %v565_v54  ;;  %v995_v54 = vld [vmem:[#allocation2 + $0x438] sm:$0xff]  ;;  %v1026_v55 = vld [vmem:[#allocation2 + $0x530] sm:$0xff] }
  0xf2   :  { %2688 = vmatpush3.bf16.xpose.msra.mxu0 %v2687_v63  ;;  %v2741_v63 = vpack.c.bf16 %v584_v59, %v583_v58  ;;  %v1027_v58 = vld [vmem:[#allocation2 + $0x538] sm:$0xff]  ;;  %v1012_v59 = vld [vmem:[#allocation2 + $0x4c0] sm:$0xff] }
  0xf3   :  { %2720 = vmatpush3.bf16.xpose.msra.mxu1 %v2719_v0  ;;  %2690 = vmatprep.subr.bf16.mxu0 %v2689_v1  ;;  %v535_v0 = vld [vmem:[#allocation4 + $0x270] sm:$0xff]  ;;  %v536_v1 = vld [vmem:[#allocation4 + $0x278] sm:$0xff]  ;;  %v2791_v5 = vpack.c.bf16 %v1027_v58, %v1026_v55 }
  0xf4   :  { %2722 = vmatprep.subr.bf16.mxu1 %v2721_v2  ;;  %v567_v2 = vld [vmem:[#allocation4 + $0x370] sm:$0xff]  ;;  %v2711_v8 = vpack.c.bf16 %v536_v1, %v535_v0  ;;  %v1045_v0 = vld [vmem:[#allocation2 + $0x5c8] sm:$0xff] }
  0xf5   :  { %v2743_v9 = vpack.c.bf16 %v568_v3, %v567_v2  ;;  %v2759_v3 = vpack.c.bf16 %v995_v54, %v994_v53  ;;  %v1100_v53 = vld [vmem:[#allocation2 + $0x780] sm:$0xff]  ;;  %v1101_v54 = vld [vmem:[#allocation2 + $0x788] sm:$0xff] }
  0xfa   :  { %2692 = vmatpush3.bf16.xpose.msra.mxu0 %v2691_v11  ;;  %v2777_v11 = vpack.c.bf16 %v1037_v7, %v1036_v6 }
  0xfb   :  { %2724 = vmatpush3.bf16.xpose.msra.mxu1 %v2723_v12  ;;  %2694 = vmatprep.subr.bf16.mxu0 %v2693_v13  ;;  %v988_v12 = vld [vmem:[#allocation2 + $0x400] sm:$0xff]  ;;  %v989_v13 = vld [vmem:[#allocation2 + $0x408] sm:$0xff] }
  0xfc   :  { %2726 = vmatprep.subr.bf16.mxu1 %v2725_v14  ;;  %v1020_v14 = vld [vmem:[#allocation2 + $0x500] sm:$0xff]  ;;  %v2747_v20 = vpack.c.bf16 %v989_v13, %v988_v12  ;;  %v997_v12 = vld [vmem:[#allocation2 + $0x448] sm:$0xff] }
  0xfd   :  { %v2779_v21 = vpack.c.bf16 %v1021_v15, %v1020_v14  ;;  %v1028_v13 = vld [vmem:[#allocation2 + $0x540] sm:$0xff]  ;;  %v1029_v14 = vld [vmem:[#allocation2 + $0x548] sm:$0xff]  ;;  %v1014_v15 = vld [vmem:[#allocation2 + $0x4d0] sm:$0xff] }
 0x102   :  { %2696 = vmatpush3.bf16.xpose.msra.mxu0 %v2695_v23  ;;  %v2781_v23 = vpack.c.bf16 %v1039_v19, %v1038_v18  ;;  %v1047_v18 = vld [vmem:[#allocation2 + $0x5d8] sm:$0xff] }
 0x103   :  { %2728 = vmatpush3.bf16.xpose.msra.mxu1 %v2727_v24  ;;  %2698 = vmatprep.subr.bf16.mxu0 %v2697_v25  ;;  %v990_v24 = vld [vmem:[#allocation2 + $0x410] sm:$0xff]  ;;  %v991_v25 = vld [vmem:[#allocation2 + $0x418] sm:$0xff] }
 0x104   :  { %2730 = vmatprep.subr.bf16.mxu1 %v2729_v26  ;;  %v1022_v26 = vld [vmem:[#allocation2 + $0x510] sm:$0xff]  ;;  %v2751_v32 = vpack.c.bf16 %v991_v25, %v990_v24  ;;  %v999_v24 = vld [vmem:[#allocation2 + $0x458] sm:$0xff] }
 0x105   :  { %v2783_v33 = vpack.c.bf16 %v1023_v27, %v1022_v26  ;;  %v1030_v25 = vld [vmem:[#allocation2 + $0x550] sm:$0xff]  ;;  %v1031_v26 = vld [vmem:[#allocation2 + $0x558] sm:$0xff]  ;;  %v1016_v27 = vld [vmem:[#allocation2 + $0x4e0] sm:$0xff] }
 0x10a   :  { %2700 = vmatpush3.bf16.xpose.msra.mxu0 %v2699_v35  ;;  %v2785_v35 = vpack.c.bf16 %v1041_v31, %v1040_v30  ;;  %v1049_v30 = vld [vmem:[#allocation2 + $0x5e8] sm:$0xff] }
 0x10b   :  { %2732 = vmatpush3.bf16.xpose.msra.mxu1 %v2731_v36  ;;  %2702 = vmatprep.subr.bf16.mxu0 %v2701_v37  ;;  %v992_v36 = vld [vmem:[#allocation2 + $0x420] sm:$0xff]  ;;  %v993_v37 = vld [vmem:[#allocation2 + $0x428] sm:$0xff] }
 0x10c   :  { %2734 = vmatprep.subr.bf16.mxu1 %v2733_v38  ;;  %v1024_v38 = vld [vmem:[#allocation2 + $0x520] sm:$0xff] }
 0x112   :  { %2704 = vmatpush3.bf16.xpose.msra.mxu0 %v2703_v48  ;;  %v2787_v48 = vpack.c.bf16 %v1025_v39, %v1024_v38  ;;  %v1033_v38 = vld [vmem:[#allocation2 + $0x568] sm:$0xff]  ;;  %v1018_v39 = vld [vmem:[#allocation2 + $0x4f0] sm:$0xff] }
 0x113   :  { %2736 = vmatpush3.bf16.xpose.msra.mxu1 %v2735_v49  ;;  %2706 = vmatprep.subr.bf16.mxu0 %v2705_v50  ;;  %v2757_v49 = vpack.c.bf16 %v1011_v44, %v1010_v43  ;;  %v883_v50 = vunpack.c.0.s8 %v882_v41  ;;  %v1050_v41 = vld [vmem:[#allocation2 + $0x5f0] sm:$0xff]  ;;  %v2773_v46 = vpack.c.bf16 %v1019_v40, %v1018_v39  ;;  %v1091_v40 = vld [vmem:[#allocation2 + $0x738] sm:$0xff] }
 0x114   :  { %2738 = vmatprep.subr.bf16.mxu1 %v2737_v51  ;;  %v885_v51 = vshrl.u32 %v884_v42, 7  ;;  %v1051_v42 = vld [vmem:[#allocation2 + $0x5f8] sm:$0xff] }
 0x115   :  { %v2805_v47 = vpack.c.bf16 %v1051_v42, %v1050_v41  ;;  %v1076_v41 = vld [vmem:[#allocation2 + $0x6c0] sm:$0xff]  ;;  %v1077_v42 = vld [vmem:[#allocation2 + $0x6c8] sm:$0xff] }
 0x116   :  { %v3132_v57 = vsub.s32 %v883_v50, %v885_v51  ;;  %v1035_v50 = vld [vmem:[#allocation2 + $0x578] sm:$0xff]  ;;  %v1068_v51 = vld [vmem:[#allocation2 + $0x680] sm:$0xff] }
 0x11a   :  { %2708 = vmatpush3.bf16.xpose.msra.mxu0 %v2707_v60  ;;  %v1013_v60 = vld [vmem:[#allocation2 + $0x4c8] sm:$0xff] }
 0x11b   :  { %2740 = vmatpush3.bf16.xpose.msra.mxu1 %v2739_v61  ;;  %2710 = vmatprep.subr.bf16.mxu0 %v2709_v62  ;;  %v2761_v6 = vpack.c.bf16 %v1013_v60, %v1012_v59  ;;  %v2841_v59 = vpack.c.bf16 %v1101_v54, %v1100_v53  ;;  %v1052_v60 = vld [vmem:[#allocation2 + $0x600] sm:$0xff] }
 0x11c   :  { %2742 = vmatprep.subr.bf16.mxu1 %v2741_v63  ;;  %v1044_v63 = vld [vmem:[#allocation2 + $0x5c0] sm:$0xff] }
 0x122   :  { %2712 = vmatpush3.bf16.xpose.msra.mxu0 %v2711_v8  ;;  %v2793_v8 = vpack.c.bf16 %v1045_v0, %v1044_v63  ;;  %v1085_v63 = vld [vmem:[#allocation2 + $0x708] sm:$0xff]  ;;  %v1070_v0 = vld [vmem:[#allocation2 + $0x690] sm:$0xff] }
 0x123   :  { %2744 = vmatpush3.bf16.xpose.msra.mxu1 %v2743_v9  ;;  %2746 = vmatprep.subr.bf16.mxu0 %v2745_v10 }
 0x124   :  { %2778 = vmatprep.subr.bf16.mxu1 %v2777_v11  ;;  %v996_v11 = vld [vmem:[#allocation2 + $0x440] sm:$0xff] }
 0x125   :  { %v2763_v19 = vpack.c.bf16 %v997_v12, %v996_v11  ;;  %v3145_v11 = vld [vmem:[%s3207_s0] sm:$0x3]  ;;  %v1054_v12 = vld [vmem:[#allocation2 + $0x610] sm:$0xff] }
 0x129   :  { %2182 = vmatmul.mubr.f32.vlgmr.msra.gmra.mrb[6].mxu0 %v3112_v45 }
 0x12a   :  { %2216 = vmatmul.mubr.f32.vlgmr.msra.gmra.mrb[6].mxu1 %v3112_v45  ;;  %2748 = vmatpush3.bf16.xpose.msra.mxu0 %v2747_v20  ;;  %v2795_v20 = vpack.c.bf16 %v1029_v14, %v1028_v13  ;;  %v1055_v13 = vld [vmem:[#allocation2 + $0x618] sm:$0xff]  ;;  %v1086_v14 = vld [vmem:[#allocation2 + $0x710] sm:$0xff] }
 0x12b   :  { %2780 = vmatpush3.bf16.xpose.msra.mxu1 %v2779_v21  ;;  %2750 = vmatprep.subr.bf16.mxu0 %v2749_v22  ;;  %v2765_v21 = vpack.c.bf16 %v1015_v16, %v1014_v15  ;;  %v2797_v22 = vpack.c.bf16 %v1047_v18, %v1046_v17  ;;  %v1087_v15 = vld [vmem:[#allocation2 + $0x718] sm:$0xff]  ;;  %v1072_v16 = vld [vmem:[#allocation2 + $0x6a0] sm:$0xff]  ;;  %v1073_v17 = vld [vmem:[#allocation2 + $0x6a8] sm:$0xff] }
 0x12c   :  { %2782 = vmatprep.subr.bf16.mxu1 %v2781_v23  ;;  %2249 = vmatprep.mubr.f32.mxu0 %v3112_v45  ;;  %v998_v23 = vld [vmem:[#allocation2 + $0x450] sm:$0xff]  ;;  %v1104_v18 = vld [vmem:[#allocation2 + $0x7a0] sm:$0xff] }
 0x12d   :  { %2283 = vmatprep.mubr.f32.mxu1 %v3112_v45  ;;  %v2755_v45 = vpack.c.bf16 %v993_v37, %v992_v36  ;;  %v2767_v31 = vpack.c.bf16 %v999_v24, %v998_v23  ;;  %v1001_v36 = vld [vmem:[#allocation2 + $0x468] sm:$0xff]  ;;  %v1032_v37 = vld [vmem:[#allocation2 + $0x560] sm:$0xff] }
 0x12e   :  { %v2803_v44 = vpack.c.bf16 %v1033_v38, %v1032_v37  ;;  %v1056_v24 = vld [vmem:[#allocation2 + $0x620] sm:$0xff]  ;;  %v1059_v37 = vld [vmem:[#allocation2 + $0x638] sm:$0xff]  ;;  %v1090_v38 = vld [vmem:[#allocation2 + $0x730] sm:$0xff] }
 0x132   :  { %2752 = vmatpush3.bf16.xpose.msra.mxu0 %v2751_v32  ;;  %v2799_v32 = vpack.c.bf16 %v1031_v26, %v1030_v25  ;;  %v1057_v25 = vld [vmem:[#allocation2 + $0x628] sm:$0xff]  ;;  %v1088_v26 = vld [vmem:[#allocation2 + $0x720] sm:$0xff] }
 0x133   :  { %2784 = vmatpush3.bf16.xpose.msra.mxu1 %v2783_v33  ;;  %2754 = vmatprep.subr.bf16.mxu0 %v2753_v34  ;;  %v2769_v33 = vpack.c.bf16 %v1017_v28, %v1016_v27  ;;  %v2801_v34 = vpack.c.bf16 %v1049_v30, %v1048_v29  ;;  %v1089_v27 = vld [vmem:[#allocation2 + $0x728] sm:$0xff]  ;;  %v1074_v28 = vld [vmem:[#allocation2 + $0x6b0] sm:$0xff]  ;;  %v1075_v29 = vld [vmem:[#allocation2 + $0x6b8] sm:$0xff] }
 0x134   :  { %2786 = vmatprep.subr.bf16.mxu1 %v2785_v35  ;;  %v1000_v35 = vld [vmem:[#allocation2 + $0x460] sm:$0xff]  ;;  %v1106_v30 = vld [vmem:[#allocation2 + $0x7b0] sm:$0xff] }
 0x135   :  { %v2771_v43 = vpack.c.bf16 %v1001_v36, %v1000_v35  ;;  %v1058_v36 = vld [vmem:[#allocation2 + $0x630] sm:$0xff] }
 0x13a   :  { %2756 = vmatpush3.bf16.xpose.msra.mxu0 %v2755_v45  ;;  %v1002_v45 = vld [vmem:[#allocation2 + $0x470] sm:$0xff] }
 0x13b   :  { %2788 = vmatpush3.bf16.xpose.msra.mxu1 %v2787_v48  ;;  %2758 = vmatprep.subr.bf16.mxu0 %v2757_v49  ;;  %v1003_v48 = vld [vmem:[#allocation2 + $0x478] sm:$0xff]  ;;  %v1034_v49 = vld [vmem:[#allocation2 + $0x570] sm:$0xff] }
 0x13c   :  { %v239_v56 = vpop.f32.mrb[0].mxu0  ;;  %2790 = vmatprep.subr.bf16.mxu1 %v2789_v52  ;;  %v1069_v52 = vld [vmem:[#allocation2 + $0x688] sm:$0xff]  ;;  %v2775_v55 = vpack.c.bf16 %v1003_v48, %v1002_v45 }
 0x13d   :  { %v310_v61 = vpop.f32.mrb[0].mxu1  ;;  %v241_v62 = vpop.f32.mrb[1].mxu0  ;;  %v2809_v58 = vpack.c.bf16 %v1069_v52, %v1068_v51  ;;  %v2855_v51 = vpack.c.bf16 %v1091_v40, %v1090_v38  ;;  %v2825_v52 = vpack.c.bf16 %v1077_v42, %v1076_v41  ;;  %v1417_v38 = vld [vmem:[#allocation4 + $0x480] sm:$0xff]  ;;  %v1450_v41 = vld [vmem:[#allocation4 + $0x588] sm:$0xff] }
 0x13e   :  { %v877_v1 = vcombine.low %v239_v56, %v241_v62  ;;  %v312_v2 = vpop.f32.mrb[1].mxu1  ;;  %v2807_v56 = vpack.c.bf16 %v1035_v50, %v1034_v49  ;;  %v1084_v62 = vld [vmem:[#allocation2 + $0x700] sm:$0xff]  ;;  %v2823_v49 = vpack.c.bf16 %v1059_v37, %v1058_v36  ;;  %v1098_v36 = vld [vmem:[#allocation2 + $0x770] sm:$0xff]  ;;  %v1099_v37 = vld [vmem:[#allocation2 + $0x778] sm:$0xff] }
 0x13f   :  { %v878_v4 = vcombine.low %v310_v61, %v312_v2  ;;  %v1053_v61 = vld [vmem:[#allocation2 + $0x608] sm:$0xff]  ;;  %v1102_v2 = vld [vmem:[#allocation2 + $0x790] sm:$0xff]  ;;  %v1449_v40 = vld [vmem:[#allocation4 + $0x580] sm:$0xff] }
 0x140   :  { %v3135_v7 = vrot.slane %v877_v1, %v3132_v57  ;;  %v1071_v1 = vld [vmem:[#allocation2 + $0x698] sm:$0xff] }
 0x141   :  { %v3138_v9 = vrot.slane %v878_v4, %v3132_v57  ;;  %v2811_v4 = vpack.c.bf16 %v1053_v61, %v1052_v60  ;;  %v1092_v60 = vld [vmem:[#allocation2 + $0x740] sm:$0xff]  ;;  %v1093_v61 = vld [vmem:[#allocation2 + $0x748] sm:$0xff] }
 0x142   :  { %2760 = vmatpush3.bf16.xpose.msra.mxu0 %v2759_v3  ;;  %v1103_v3 = vld [vmem:[#allocation2 + $0x798] sm:$0xff] }
 0x143   :  { %v909_v10 = vcombine.low %v3135_v7, %v3138_v9  ;;  %2792 = vmatpush3.bf16.xpose.msra.mxu1 %v2791_v5  ;;  %2762 = vmatprep.subr.bf16.mxu0 %v2761_v6  ;;  %v2843_v5 = vpack.c.bf16 %v1085_v63, %v1084_v62  ;;  %v2813_v6 = vpack.c.bf16 %v1071_v1, %v1070_v0  ;;  %v1078_v62 = vld [vmem:[#allocation2 + $0x6d0] sm:$0xff]  ;;  %v1079_v63 = vld [vmem:[#allocation2 + $0x6d8] sm:$0xff] }
 0x144   :  { %2794 = vmatprep.subr.bf16.mxu1 %v2793_v8  ;;  %v2845_v8 = vpack.c.bf16 %v1103_v3, %v1102_v2  ;;  %v1110_v2 = vld [vmem:[#allocation2 + $0x7d0] sm:$0xff]  ;;  %v1111_v3 = vld [vmem:[#allocation2 + $0x7d8] sm:$0xff] }
 0x145   :  { %v917_v0 = vrot.slane %v909_v10, %v3132_v57  ;;  %v1094_v7 = vld [vmem:[#allocation2 + $0x750] sm:$0xff]  ;;  %v1095_v9 = vld [vmem:[#allocation2 + $0x758] sm:$0xff]  ;;  %v1080_v10 = vld [vmem:[#allocation2 + $0x6e0] sm:$0xff] }
 0x14a   :  { %2764 = vmatpush3.bf16.xpose.msra.mxu0 %v2763_v19  ;;  %v1105_v19 = vld [vmem:[#allocation2 + $0x7a8] sm:$0xff] }
 0x14b   :  { %2796 = vmatpush3.bf16.xpose.msra.mxu1 %v2795_v20  ;;  %2766 = vmatprep.subr.bf16.mxu0 %v2765_v21  ;;  %v2815_v20 = vpack.c.bf16 %v1055_v13, %v1054_v12  ;;  %v2847_v21 = vpack.c.bf16 %v1087_v15, %v1086_v14  ;;  %v2849_v23 = vpack.c.bf16 %v1105_v19, %v1104_v18  ;;  %v1062_v13 = vld [vmem:[#allocation2 + $0x650] sm:$0xff]  ;;  %v1063_v14 = vld [vmem:[#allocation2 + $0x658] sm:$0xff]  ;;  %v1081_v15 = vld [vmem:[#allocation2 + $0x6e8] sm:$0xff] }
 0x14c   :  { %2798 = vmatprep.subr.bf16.mxu1 %v2797_v22  ;;  %v2817_v22 = vpack.c.bf16 %v1073_v17, %v1072_v16  ;;  %v2861_v12 = vpack.c.bf16 %v1111_v3, %v1110_v2  ;;  %v1112_v16 = vld [vmem:[#allocation2 + $0x7e0] sm:$0xff]  ;;  %v1113_v17 = vld [vmem:[#allocation2 + $0x7e8] sm:$0xff]  ;;  %v2831_v18 = vpack.c.bf16 %v1063_v14, %v1062_v13  ;;  %v2863_v19 = vpack.c.bf16 %v1095_v9, %v1094_v7  ;;  %v1423_v7 = vld [vmem:[#allocation4 + $0x4b0] sm:$0xff] }
 0x14d   :  { %v1454_v2 = vld [vmem:[#allocation4 + $0x5a8] sm:$0xff]  ;;  %v1437_v13 = vld [vmem:[#allocation4 + $0x520] sm:$0xff]  ;;  %v1424_v9 = vld [vmem:[#allocation4 + $0x4b8] sm:$0xff] }
 0x14e   :  { %v1438_v14 = vld [vmem:[#allocation4 + $0x528] sm:$0xff] }
 0x152   :  { %2768 = vmatpush3.bf16.xpose.msra.mxu0 %v2767_v31  ;;  %v1107_v31 = vld [vmem:[#allocation2 + $0x7b8] sm:$0xff] }
 0x153   :  { %2800 = vmatpush3.bf16.xpose.msra.mxu1 %v2799_v32  ;;  %2770 = vmatprep.subr.bf16.mxu0 %v2769_v33  ;;  %v2819_v32 = vpack.c.bf16 %v1057_v25, %v1056_v24  ;;  %v2851_v33 = vpack.c.bf16 %v1089_v27, %v1088_v26  ;;  %v2853_v35 = vpack.c.bf16 %v1107_v31, %v1106_v30  ;;  %v1096_v24 = vld [vmem:[#allocation2 + $0x760] sm:$0xff]  ;;  %v1097_v25 = vld [vmem:[#allocation2 + $0x768] sm:$0xff]  ;;  %v1082_v26 = vld [vmem:[#allocation2 + $0x6f0] sm:$0xff] }
 0x154   :  { %2802 = vmatprep.subr.bf16.mxu1 %v2801_v34  ;;  %v2821_v34 = vpack.c.bf16 %v1075_v29, %v1074_v28  ;;  %v1083_v27 = vld [vmem:[#allocation2 + $0x6f8] sm:$0xff]  ;;  %v1114_v28 = vld [vmem:[#allocation2 + $0x7f0] sm:$0xff]  ;;  %v2867_v31 = vpack.c.bf16 %v1097_v25, %v1096_v24  ;;  %v1425_v25 = vld [vmem:[#allocation4 + $0x4c0] sm:$0xff] }
 0x155   :  { %v1115_v29 = vld [vmem:[#allocation2 + $0x7f8] sm:$0xff] }
 0x156   :  { %v1440_v24 = vld [vmem:[#allocation4 + $0x538] sm:$0xff] }
 0x15a   :  { %2772 = vmatpush3.bf16.xpose.msra.mxu0 %v2771_v43 }
 0x15b   :  { %2804 = vmatpush3.bf16.xpose.msra.mxu1 %v2803_v44  ;;  %2774 = vmatprep.subr.bf16.mxu0 %v2773_v46  ;;  %v1108_v46 = vld [vmem:[#allocation2 + $0x7c0] sm:$0xff] }
 0x15c   :  { %2806 = vmatprep.subr.bf16.mxu1 %v2805_v47  ;;  %v1109_v47 = vld [vmem:[#allocation2 + $0x7c8] sm:$0xff] }
 0x15d   :  { %v2857_v54 = vpack.c.bf16 %v1109_v47, %v1108_v46  ;;  %v2905_v46 = vpack.c.bf16 %v1450_v41, %v1449_v40  ;;  %v1401_v47 = vld [vmem:[#allocation4 + $0x400] sm:$0xff] }
 0x15e   :  { %v1409_v41 = vld [vmem:[#allocation4 + $0x440] sm:$0xff] }
 0x162   :  { %2776 = vmatpush3.bf16.xpose.msra.mxu0 %v2775_v55 }
 0x163   :  { %2808 = vmatpush3.bf16.xpose.msra.mxu1 %v2807_v56  ;;  %2810 = vmatprep.subr.bf16.mxu0 %v2809_v58  ;;  %v1060_v58 = vld [vmem:[#allocation2 + $0x640] sm:$0xff] }
 0x164   :  { %2842 = vmatprep.subr.bf16.mxu1 %v2841_v59  ;;  %v1061_v59 = vld [vmem:[#allocation2 + $0x648] sm:$0xff] }
 0x169   :  { %2250 = vmatmul.mubr.f32.vlgmr.msra.gmra.mrb[8].mxu0 %v3145_v11 }
 0x16a   :  { %2284 = vmatmul.mubr.f32.vlgmr.msra.gmra.mrb[8].mxu1 %v3145_v11  ;;  %2812 = vmatpush3.bf16.xpose.msra.mxu0 %v2811_v4  ;;  %v2827_v4 = vpack.c.bf16 %v1061_v59, %v1060_v58  ;;  %v1403_v59 = vld [vmem:[#allocation4 + $0x410] sm:$0xff] }
 0x16b   :  { %2844 = vmatpush3.bf16.xpose.msra.mxu1 %v2843_v5  ;;  %2814 = vmatprep.subr.bf16.mxu0 %v2813_v6  ;;  %v2859_v6 = vpack.c.bf16 %v1093_v61, %v1092_v60  ;;  %v1404_v60 = vld [vmem:[#allocation4 + $0x418] sm:$0xff]  ;;  %v1435_v61 = vld [vmem:[#allocation4 + $0x510] sm:$0xff] }
 0x16c   :  { %2846 = vmatprep.subr.bf16.mxu1 %v2845_v8  ;;  %2317 = vmatprep.mubr.f32.mxu0 %v3145_v11  ;;  %v2829_v8 = vpack.c.bf16 %v1079_v63, %v1078_v62  ;;  %v1436_v62 = vld [vmem:[#allocation4 + $0x518] sm:$0xff]  ;;  %v1421_v63 = vld [vmem:[#allocation4 + $0x4a0] sm:$0xff]  ;;  %v2879_v3 = vpack.c.bf16 %v1404_v60, %v1403_v59  ;;  %v1430_v59 = vld [vmem:[#allocation4 + $0x4e8] sm:$0xff] }
 0x16d   :  { %2351 = vmatprep.mubr.f32.mxu1 %v3145_v11  ;;  %v1461_v60 = vld [vmem:[#allocation4 + $0x5e0] sm:$0xff] }
 0x172   :  { %2816 = vmatpush3.bf16.xpose.msra.mxu0 %v2815_v20  ;;  %v2833_v20 = vpack.c.bf16 %v1081_v15, %v1080_v10  ;;  %v1455_v10 = vld [vmem:[#allocation4 + $0x5b0] sm:$0xff]  ;;  %v1456_v15 = vld [vmem:[#allocation4 + $0x5b8] sm:$0xff] }
 0x173   :  { %2848 = vmatpush3.bf16.xpose.msra.mxu1 %v2847_v21  ;;  %2818 = vmatprep.subr.bf16.mxu0 %v2817_v22  ;;  %v2865_v21 = vpack.c.bf16 %v1113_v17, %v1112_v16  ;;  %v1064_v22 = vld [vmem:[#allocation2 + $0x660] sm:$0xff]  ;;  %v2915_v17 = vpack.c.bf16 %v1438_v14, %v1437_v13  ;;  %v1464_v13 = vld [vmem:[#allocation4 + $0x5f8] sm:$0xff] }
 0x174   :  { %2850 = vmatprep.subr.bf16.mxu1 %v2849_v23  ;;  %v1065_v23 = vld [vmem:[#allocation2 + $0x668] sm:$0xff] }
 0x175   :  { %v2835_v30 = vpack.c.bf16 %v1065_v23, %v1064_v22  ;;  %v1439_v22 = vld [vmem:[#allocation4 + $0x530] sm:$0xff] }
 0x17a   :  { %2820 = vmatpush3.bf16.xpose.msra.mxu0 %v2819_v32  ;;  %v2837_v32 = vpack.c.bf16 %v1083_v27, %v1082_v26  ;;  %v1426_v26 = vld [vmem:[#allocation4 + $0x4c8] sm:$0xff] }
 0x17b   :  { %2852 = vmatpush3.bf16.xpose.msra.mxu1 %v2851_v33  ;;  %2822 = vmatprep.subr.bf16.mxu0 %v2821_v34  ;;  %v2869_v33 = vpack.c.bf16 %v1115_v29, %v1114_v28  ;;  %v1066_v34 = vld [vmem:[#allocation2 + $0x670] sm:$0xff]  ;;  %v1457_v29 = vld [vmem:[#allocation4 + $0x5c0] sm:$0xff] }
 0x17c   :  { %v381_v39 = vpop.f32.mrb[2].mxu0  ;;  %2854 = vmatprep.subr.bf16.mxu1 %v2853_v35  ;;  %v1067_v35 = vld [vmem:[#allocation2 + $0x678] sm:$0xff] }
 0x17d   :  { %v452_v43 = vpop.f32.mrb[2].mxu1  ;;  %v383_v44 = vpop.f32.mrb[3].mxu0  ;;  %v2839_v42 = vpack.c.bf16 %v1067_v35, %v1066_v34  ;;  %v2919_v35 = vpack.c.bf16 %v1440_v24, %v1439_v22  ;;  %v1514_v22 = vld [vmem:[#allocation4 + $0x788] sm:$0xff] }
 0x17e   :  { %v879_v45 = vcombine.low %v381_v39, %v383_v44  ;;  %v454_v48 = vpop.f32.mrb[3].mxu1  ;;  %v1418_v39 = vld [vmem:[#allocation4 + $0x488] sm:$0xff] }
 0x17f   :  { %v880_v50 = vcombine.low %v452_v43, %v454_v48  ;;  %v2871_v43 = vpack.c.bf16 %v1099_v37, %v1098_v36  ;;  %v2873_v44 = vpack.c.bf16 %v1418_v39, %v1417_v38  ;;  %v1433_v48 = vld [vmem:[#allocation4 + $0x500] sm:$0xff]  ;;  %v2889_v36 = vpack.c.bf16 %v1426_v26, %v1425_v25 }
 0x180   :  { %v901_v53 = vrot.slane %v879_v45, %v3132_v57  ;;  %v1402_v45 = vld [vmem:[#allocation4 + $0x408] sm:$0xff] }
 0x181   :  { %v908_v55 = vrot.slane %v880_v50, %v3132_v57  ;;  %v1419_v50 = vld [vmem:[#allocation4 + $0x490] sm:$0xff] }
 0x182   :  { %2824 = vmatpush3.bf16.xpose.msra.mxu0 %v2823_v49  ;;  %v1434_v49 = vld [vmem:[#allocation4 + $0x508] sm:$0xff] }
 0x183   :  { %v910_v56 = vcombine.low %v901_v53, %v908_v55  ;;  %2856 = vmatpush3.bf16.xpose.msra.mxu1 %v2855_v51  ;;  %2826 = vmatprep.subr.bf16.mxu0 %v2825_v52  ;;  %v1420_v51 = vld [vmem:[#allocation4 + $0x498] sm:$0xff]  ;;  %v1451_v52 = vld [vmem:[#allocation4 + $0x590] sm:$0xff]  ;;  %v2907_v55 = vpack.c.bf16 %v1434_v49, %v1433_v48 }
 0x184   :  { %2858 = vmatprep.subr.bf16.mxu1 %v2857_v54  ;;  %v1452_v53 = vld [vmem:[#allocation4 + $0x598] sm:$0xff]  ;;  %v2875_v54 = vpack.c.bf16 %v1402_v45, %v1401_v47  ;;  %v1459_v45 = vld [vmem:[#allocation4 + $0x5d0] sm:$0xff] }
 0x185   :  { %v924_v1 = vrot.slane %v910_v56, %v3132_v57  ;;  %v2877_v56 = vpack.c.bf16 %v1420_v51, %v1419_v50  ;;  %v2909_v58 = vpack.c.bf16 %v1452_v53, %v1451_v52  ;;  %v1428_v47 = vld [vmem:[#allocation4 + $0x4d8] sm:$0xff]  ;;  %v1411_v53 = vld [vmem:[#allocation4 + $0x450] sm:$0xff] }
 0x186   :  { %v1460_v48 = vld [vmem:[#allocation4 + $0x5d8] sm:$0xff] }
 0x187   :  { %v925_v5 = vcombine.low %v917_v0, %v924_v1  ;;  %v1422_v0 = vld [vmem:[#allocation4 + $0x4a8] sm:$0xff]  ;;  %v1453_v1 = vld [vmem:[#allocation4 + $0x5a0] sm:$0xff]  ;;  %v2925_v52 = vpack.c.bf16 %v1460_v48, %v1459_v45 }
 0x188   :  { %v1486_v45 = vld [vmem:[#allocation4 + $0x6a8] sm:$0xff]  ;;  %v1517_v48 = vld [vmem:[#allocation4 + $0x7a0] sm:$0xff] }
 0x189   :  { %927 = vst [vmem:[%s3210_s3] ss:$2 sm:$0xff] %v925_v5  ;;  %v2881_v5 = vpack.c.bf16 %v1422_v0, %v1421_v63 }
 0x18a   :  { %2828 = vmatpush3.bf16.xpose.msra.mxu0 %v2827_v4  ;;  %v2911_v4 = vpack.c.bf16 %v1436_v62, %v1435_v61  ;;  %v1462_v61 = vld [vmem:[#allocation4 + $0x5e8] sm:$0xff] }
 0x18b   :  { %2860 = vmatpush3.bf16.xpose.msra.mxu1 %v2859_v6  ;;  %2830 = vmatprep.subr.bf16.mxu0 %v2829_v8  ;;  %v2913_v6 = vpack.c.bf16 %v1454_v2, %v1453_v1  ;;  %v1405_v8 = vld [vmem:[#allocation4 + $0x420] sm:$0xff]  ;;  %v2929_v1 = vpack.c.bf16 %v1462_v61, %v1461_v60  ;;  %v1488_v60 = vld [vmem:[#allocation4 + $0x6b8] sm:$0xff]  ;;  %v1519_v61 = vld [vmem:[#allocation4 + $0x7b0] sm:$0xff] }
 0x18c   :  { %2862 = vmatprep.subr.bf16.mxu1 %v2861_v12  ;;  %v1406_v12 = vld [vmem:[#allocation4 + $0x428] sm:$0xff]  ;;  %v1413_v2 = vld [vmem:[#allocation4 + $0x460] sm:$0xff] }
 0x18d   :  { %v2883_v16 = vpack.c.bf16 %v1406_v12, %v1405_v8  ;;  %v1432_v8 = vld [vmem:[#allocation4 + $0x4f8] sm:$0xff]  ;;  %v1463_v12 = vld [vmem:[#allocation4 + $0x5f0] sm:$0xff] }
 0x192   :  { %2832 = vmatpush3.bf16.xpose.msra.mxu0 %v2831_v18  ;;  %v2885_v18 = vpack.c.bf16 %v1424_v9, %v1423_v7 }
 0x193   :  { %2864 = vmatpush3.bf16.xpose.msra.mxu1 %v2863_v19  ;;  %2834 = vmatprep.subr.bf16.mxu0 %v2833_v20  ;;  %v2917_v19 = vpack.c.bf16 %v1456_v15, %v1455_v10  ;;  %v1407_v20 = vld [vmem:[#allocation4 + $0x430] sm:$0xff]  ;;  %v2933_v10 = vpack.c.bf16 %v1464_v13, %v1463_v12  ;;  %v1489_v12 = vld [vmem:[#allocation4 + $0x6c0] sm:$0xff]  ;;  %v1490_v13 = vld [vmem:[#allocation4 + $0x6c8] sm:$0xff] }
 0x194   :  { %2866 = vmatprep.subr.bf16.mxu1 %v2865_v21  ;;  %v1408_v21 = vld [vmem:[#allocation4 + $0x438] sm:$0xff]  ;;  %v1415_v15 = vld [vmem:[#allocation4 + $0x470] sm:$0xff] }
 0x19a   :  { %2836 = vmatpush3.bf16.xpose.msra.mxu0 %v2835_v30  ;;  %v1458_v30 = vld [vmem:[#allocation4 + $0x5c8] sm:$0xff] }
 0x19b   :  { %2868 = vmatpush3.bf16.xpose.msra.mxu1 %v2867_v31  ;;  %2838 = vmatprep.subr.bf16.mxu0 %v2837_v32  ;;  %v2921_v38 = vpack.c.bf16 %v1458_v30, %v1457_v29  ;;  %v1497_v29 = vld [vmem:[#allocation4 + $0x700] sm:$0xff]  ;;  %v1498_v30 = vld [vmem:[#allocation4 + $0x708] sm:$0xff] }
 0x19c   :  { %2870 = vmatprep.subr.bf16.mxu1 %v2869_v33  ;;  %v2887_v33 = vpack.c.bf16 %v1408_v21, %v1407_v20  ;;  %v1482_v20 = vld [vmem:[#allocation4 + $0x688] sm:$0xff]  ;;  %v1513_v21 = vld [vmem:[#allocation4 + $0x780] sm:$0xff] }
 0x19d   :  { %v2969_v26 = vpack.c.bf16 %v1514_v22, %v1513_v21 }
 0x1a2   :  { %2840 = vmatpush3.bf16.xpose.msra.mxu0 %v2839_v42  ;;  %v1410_v42 = vld [vmem:[#allocation4 + $0x448] sm:$0xff] }
 0x1a3   :  { %2872 = vmatpush3.bf16.xpose.msra.mxu1 %v2871_v43  ;;  %2874 = vmatprep.subr.bf16.mxu0 %v2873_v44  ;;  %v1441_v43 = vld [vmem:[#allocation4 + $0x540] sm:$0xff]  ;;  %v1442_v44 = vld [vmem:[#allocation4 + $0x548] sm:$0xff]  ;;  %v2891_v49 = vpack.c.bf16 %v1410_v42, %v1409_v41  ;;  %v1467_v42 = vld [vmem:[#allocation4 + $0x610] sm:$0xff] }
 0x1a4   :  { %2906 = vmatprep.subr.bf16.mxu1 %v2905_v46  ;;  %v1427_v46 = vld [vmem:[#allocation4 + $0x4d0] sm:$0xff]  ;;  %v2923_v50 = vpack.c.bf16 %v1442_v44, %v1441_v43  ;;  %v1468_v43 = vld [vmem:[#allocation4 + $0x618] sm:$0xff] }
 0x1a5   :  { %v2893_v51 = vpack.c.bf16 %v1428_v47, %v1427_v46  ;;  %v1499_v44 = vld [vmem:[#allocation4 + $0x710] sm:$0xff]  ;;  %v1500_v46 = vld [vmem:[#allocation4 + $0x718] sm:$0xff]  ;;  %v1485_v47 = vld [vmem:[#allocation4 + $0x6a0] sm:$0xff] }
 0x1a9   :  { %2318 = vmatmul.mubr.f32.vlgmr.msra.gmra.mrb[10].mxu0 %v3145_v11 }
 0x1aa   :  { %2352 = vmatmul.mubr.f32.vlgmr.msra.gmra.mrb[10].mxu1 %v3145_v11  ;;  %2876 = vmatpush3.bf16.xpose.msra.mxu0 %v2875_v54  ;;  %v1412_v54 = vld [vmem:[#allocation4 + $0x458] sm:$0xff] }
 0x1ab   :  { %2908 = vmatpush3.bf16.xpose.msra.mxu1 %v2907_v55  ;;  %2878 = vmatprep.subr.bf16.mxu0 %v2877_v56  ;;  %v1443_v55 = vld [vmem:[#allocation4 + $0x550] sm:$0xff]  ;;  %v1444_v56 = vld [vmem:[#allocation4 + $0x558] sm:$0xff]  ;;  %v2895_v62 = vpack.c.bf16 %v1412_v54, %v1411_v53  ;;  %v1469_v54 = vld [vmem:[#allocation4 + $0x620] sm:$0xff] }
 0x1ac   :  { %2910 = vmatprep.subr.bf16.mxu1 %v2909_v58  ;;  %2385 = vmatprep.mubr.f32.mxu0 %v3145_v11  ;;  %v1429_v58 = vld [vmem:[#allocation4 + $0x4e0] sm:$0xff]  ;;  %v2927_v63 = vpack.c.bf16 %v1444_v56, %v1443_v55  ;;  %v1470_v55 = vld [vmem:[#allocation4 + $0x628] sm:$0xff] }
 0x1ad   :  { %2419 = vmatprep.mubr.f32.mxu1 %v3145_v11  ;;  %v2897_v0 = vpack.c.bf16 %v1430_v59, %v1429_v58  ;;  %v1501_v56 = vld [vmem:[#allocation4 + $0x720] sm:$0xff]  ;;  %v1502_v58 = vld [vmem:[#allocation4 + $0x728] sm:$0xff]  ;;  %v1487_v59 = vld [vmem:[#allocation4 + $0x6b0] sm:$0xff] }
 0x1b2   :  { %2880 = vmatpush3.bf16.xpose.msra.mxu0 %v2879_v3  ;;  %v1414_v3 = vld [vmem:[#allocation4 + $0x468] sm:$0xff] }
 0x1b3   :  { %2912 = vmatpush3.bf16.xpose.msra.mxu1 %v2911_v4  ;;  %2882 = vmatprep.subr.bf16.mxu0 %v2881_v5  ;;  %v1445_v4 = vld [vmem:[#allocation4 + $0x560] sm:$0xff]  ;;  %v1446_v5 = vld [vmem:[#allocation4 + $0x568] sm:$0xff]  ;;  %v2899_v14 = vpack.c.bf16 %v1414_v3, %v1413_v2  ;;  %v1471_v3 = vld [vmem:[#allocation4 + $0x630] sm:$0xff] }
 0x1b4   :  { %2914 = vmatprep.subr.bf16.mxu1 %v2913_v6  ;;  %v1431_v6 = vld [vmem:[#allocation4 + $0x4f0] sm:$0xff]  ;;  %v2931_v7 = vpack.c.bf16 %v1446_v5, %v1445_v4  ;;  %v1472_v4 = vld [vmem:[#allocation4 + $0x638] sm:$0xff] }
 0x1b5   :  { %v2901_v9 = vpack.c.bf16 %v1432_v8, %v1431_v6  ;;  %v1503_v5 = vld [vmem:[#allocation4 + $0x730] sm:$0xff]  ;;  %v1504_v8 = vld [vmem:[#allocation4 + $0x738] sm:$0xff] }
 0x1ba   :  { %2884 = vmatpush3.bf16.xpose.msra.mxu0 %v2883_v16  ;;  %v1416_v16 = vld [vmem:[#allocation4 + $0x478] sm:$0xff] }
 0x1bb   :  { %2916 = vmatpush3.bf16.xpose.msra.mxu1 %v2915_v17  ;;  %2886 = vmatprep.subr.bf16.mxu0 %v2885_v18  ;;  %v1447_v17 = vld [vmem:[#allocation4 + $0x570] sm:$0xff]  ;;  %v1448_v18 = vld [vmem:[#allocation4 + $0x578] sm:$0xff] }
 0x1bc   :  { %v651_v23 = vpop.f32.mrb[4].mxu0  ;;  %2918 = vmatprep.subr.bf16.mxu1 %v2917_v19  ;;  %v1481_v19 = vld [vmem:[#allocation4 + $0x680] sm:$0xff]  ;;  %v2935_v24 = vpack.c.bf16 %v1448_v18, %v1447_v17  ;;  %v2951_v17 = vpack.c.bf16 %v1472_v4, %v1471_v3  ;;  %v1511_v3 = vld [vmem:[#allocation4 + $0x770] sm:$0xff]  ;;  %v1512_v4 = vld [vmem:[#allocation4 + $0x778] sm:$0xff] }
 0x1bd   :  { %v722_v27 = vpop.f32.mrb[4].mxu1  ;;  %v653_v28 = vpop.f32.mrb[5].mxu0  ;;  %v2937_v25 = vpack.c.bf16 %v1482_v20, %v1481_v19  ;;  %v2983_v19 = vpack.c.bf16 %v1504_v8, %v1503_v5  ;;  %v2953_v20 = vpack.c.bf16 %v1490_v13, %v1489_v12 }
 0x1be   :  { %v936_v31 = vcombine.low %v651_v23, %v653_v28  ;;  %v724_v32 = vpop.f32.mrb[5].mxu1  ;;  %v2903_v23 = vpack.c.bf16 %v1416_v16, %v1415_v15  ;;  %v1466_v28 = vld [vmem:[#allocation4 + $0x608] sm:$0xff] }
 0x1bf   :  { %v937_v34 = vcombine.low %v722_v27, %v724_v32  ;;  %v1465_v27 = vld [vmem:[#allocation4 + $0x600] sm:$0xff]  ;;  %v1484_v32 = vld [vmem:[#allocation4 + $0x698] sm:$0xff] }
 0x1c0   :  { %v3166_v37 = vrot.slane %v936_v31, %v3132_v57  ;;  %v1483_v31 = vld [vmem:[#allocation4 + $0x690] sm:$0xff] }
 0x1c1   :  { %v3169_v39 = vrot.slane %v937_v34, %v3132_v57  ;;  %v1516_v34 = vld [vmem:[#allocation4 + $0x798] sm:$0xff] }
 0x1c2   :  { %2888 = vmatpush3.bf16.xpose.msra.mxu0 %v2887_v33  ;;  %v1515_v33 = vld [vmem:[#allocation4 + $0x790] sm:$0xff] }
 0x1c3   :  { %v968_v40 = vcombine.low %v3166_v37, %v3169_v39  ;;  %2920 = vmatpush3.bf16.xpose.msra.mxu1 %v2919_v35  ;;  %2890 = vmatprep.subr.bf16.mxu0 %v2889_v36  ;;  %v2939_v35 = vpack.c.bf16 %v1466_v28, %v1465_v27  ;;  %v2971_v36 = vpack.c.bf16 %v1498_v30, %v1497_v29  ;;  %v1505_v27 = vld [vmem:[#allocation4 + $0x740] sm:$0xff]  ;;  %v1506_v28 = vld [vmem:[#allocation4 + $0x748] sm:$0xff]  ;;  %v1491_v29 = vld [vmem:[#allocation4 + $0x6d0] sm:$0xff] }
 0x1c4   :  { %2922 = vmatprep.subr.bf16.mxu1 %v2921_v38  ;;  %v2941_v38 = vpack.c.bf16 %v1484_v32, %v1483_v31  ;;  %v2973_v41 = vpack.c.bf16 %v1516_v34, %v1515_v33  ;;  %v1492_v30 = vld [vmem:[#allocation4 + $0x6d8] sm:$0xff]  ;;  %v1523_v33 = vld [vmem:[#allocation4 + $0x7d0] sm:$0xff] }
 0x1c5   :  { %v976_v31 = vrot.slane %v968_v40, %v3132_v57  ;;  %v1524_v34 = vld [vmem:[#allocation4 + $0x7d8] sm:$0xff]  ;;  %v1507_v37 = vld [vmem:[#allocation4 + $0x750] sm:$0xff]  ;;  %v1493_v40 = vld [vmem:[#allocation4 + $0x6e0] sm:$0xff] }
 0x1c6   :  { %v1508_v39 = vld [vmem:[#allocation4 + $0x758] sm:$0xff] }
 0x1ca   :  { %2892 = vmatpush3.bf16.xpose.msra.mxu0 %v2891_v49  ;;  %v1518_v49 = vld [vmem:[#allocation4 + $0x7a8] sm:$0xff] }
 0x1cb   :  { %2924 = vmatpush3.bf16.xpose.msra.mxu1 %v2923_v50  ;;  %2894 = vmatprep.subr.bf16.mxu0 %v2893_v51  ;;  %v2943_v50 = vpack.c.bf16 %v1468_v43, %v1467_v42  ;;  %v2975_v51 = vpack.c.bf16 %v1500_v46, %v1499_v44  ;;  %v2977_v53 = vpack.c.bf16 %v1518_v49, %v1517_v48  ;;  %v1475_v43 = vld [vmem:[#allocation4 + $0x650] sm:$0xff]  ;;  %v1476_v44 = vld [vmem:[#allocation4 + $0x658] sm:$0xff]  ;;  %v1494_v46 = vld [vmem:[#allocation4 + $0x6e8] sm:$0xff] }
 0x1cc   :  { %2926 = vmatprep.subr.bf16.mxu1 %v2925_v52  ;;  %v2945_v52 = vpack.c.bf16 %v1486_v45, %v1485_v47  ;;  %v2989_v42 = vpack.c.bf16 %v1524_v34, %v1523_v33  ;;  %v1525_v47 = vld [vmem:[#allocation4 + $0x7e0] sm:$0xff]  ;;  %v1526_v45 = vld [vmem:[#allocation4 + $0x7e8] sm:$0xff]  ;;  %v2959_v48 = vpack.c.bf16 %v1476_v44, %v1475_v43  ;;  %v2991_v49 = vpack.c.bf16 %v1508_v39, %v1507_v37 }
 0x1d2   :  { %2896 = vmatpush3.bf16.xpose.msra.mxu0 %v2895_v62  ;;  %v1520_v62 = vld [vmem:[#allocation4 + $0x7b8] sm:$0xff] }
 0x1d3   :  { %2928 = vmatpush3.bf16.xpose.msra.mxu1 %v2927_v63  ;;  %2898 = vmatprep.subr.bf16.mxu0 %v2897_v0  ;;  %v2947_v63 = vpack.c.bf16 %v1470_v55, %v1469_v54  ;;  %v2979_v0 = vpack.c.bf16 %v1502_v58, %v1501_v56  ;;  %v2981_v2 = vpack.c.bf16 %v1520_v62, %v1519_v61  ;;  %v1509_v54 = vld [vmem:[#allocation4 + $0x760] sm:$0xff]  ;;  %v1510_v55 = vld [vmem:[#allocation4 + $0x768] sm:$0xff]  ;;  %v1495_v56 = vld [vmem:[#allocation4 + $0x6f0] sm:$0xff] }
 0x1d4   :  { %2930 = vmatprep.subr.bf16.mxu1 %v2929_v1  ;;  %v2949_v1 = vpack.c.bf16 %v1488_v60, %v1487_v59  ;;  %v1496_v58 = vld [vmem:[#allocation4 + $0x6f8] sm:$0xff]  ;;  %v1527_v59 = vld [vmem:[#allocation4 + $0x7f0] sm:$0xff]  ;;  %v2995_v62 = vpack.c.bf16 %v1510_v55, %v1509_v54 }
 0x1d5   :  { %v1528_v60 = vld [vmem:[#allocation4 + $0x7f8] sm:$0xff] }
 0x1da   :  { %2900 = vmatpush3.bf16.xpose.msra.mxu0 %v2899_v14 }
 0x1db   :  { %2932 = vmatpush3.bf16.xpose.msra.mxu1 %v2931_v7  ;;  %2902 = vmatprep.subr.bf16.mxu0 %v2901_v9  ;;  %v1521_v9 = vld [vmem:[#allocation4 + $0x7c0] sm:$0xff] }
 0x1dc   :  { %2934 = vmatprep.subr.bf16.mxu1 %v2933_v10  ;;  %v1522_v10 = vld [vmem:[#allocation4 + $0x7c8] sm:$0xff] }
 0x1dd   :  { %v2985_v22 = vpack.c.bf16 %v1522_v10, %v1521_v9 }
 0x1e2   :  { %2904 = vmatpush3.bf16.xpose.msra.mxu0 %v2903_v23 }
 0x1e3   :  { %2936 = vmatpush3.bf16.xpose.msra.mxu1 %v2935_v24  ;;  %2938 = vmatprep.subr.bf16.mxu0 %v2937_v25  ;;  %v1473_v25 = vld [vmem:[#allocation4 + $0x640] sm:$0xff] }
 0x1e4   :  { %2970 = vmatprep.subr.bf16.mxu1 %v2969_v26  ;;  %v1474_v26 = vld [vmem:[#allocation4 + $0x648] sm:$0xff] }
 0x1e9   :  { %2386 = vmatmul.mubr.f32.vlgmr.msra.gmra.mrb[12].mxu0 %v3145_v11 }
 0x1ea   :  { %2420 = vmatmul.mubr.f32.vlgmr.msra.gmra.mrb[12].mxu1 %v3145_v11  ;;  %2940 = vmatpush3.bf16.xpose.msra.mxu0 %v2939_v35  ;;  %v2955_v35 = vpack.c.bf16 %v1474_v26, %v1473_v25 }
 0x1eb   :  { %2972 = vmatpush3.bf16.xpose.msra.mxu1 %v2971_v36  ;;  %2942 = vmatprep.subr.bf16.mxu0 %v2941_v38  ;;  %v2987_v38 = vpack.c.bf16 %v1506_v28, %v1505_v27 }
 0x1ec   :  { %2974 = vmatprep.subr.bf16.mxu1 %v2973_v41  ;;  %2453 = vmatprep.mubr.f32.mxu0 %v3145_v11  ;;  %v2957_v41 = vpack.c.bf16 %v1492_v30, %v1491_v29 }
 0x1ed   :  { %2487 = vmatprep.mubr.f32.mxu1 %v3145_v11 }
 0x1f2   :  { %2944 = vmatpush3.bf16.xpose.msra.mxu0 %v2943_v50  ;;  %v2961_v50 = vpack.c.bf16 %v1494_v46, %v1493_v40 }
 0x1f3   :  { %2976 = vmatpush3.bf16.xpose.msra.mxu1 %v2975_v51  ;;  %2946 = vmatprep.subr.bf16.mxu0 %v2945_v52  ;;  %v2993_v51 = vpack.c.bf16 %v1526_v45, %v1525_v47  ;;  %v1477_v52 = vld [vmem:[#allocation4 + $0x660] sm:$0xff] }
 0x1f4   :  { %2978 = vmatprep.subr.bf16.mxu1 %v2977_v53  ;;  %v1478_v53 = vld [vmem:[#allocation4 + $0x668] sm:$0xff] }
 0x1f5   :  { %v2963_v61 = vpack.c.bf16 %v1478_v53, %v1477_v52 }
 0x1fa   :  { %2948 = vmatpush3.bf16.xpose.msra.mxu0 %v2947_v63  ;;  %v2965_v63 = vpack.c.bf16 %v1496_v58, %v1495_v56 }
 0x1fb   :  { %2980 = vmatpush3.bf16.xpose.msra.mxu1 %v2979_v0  ;;  %2950 = vmatprep.subr.bf16.mxu0 %v2949_v1  ;;  %v2997_v0 = vpack.c.bf16 %v1528_v60, %v1527_v59  ;;  %v1479_v1 = vld [vmem:[#allocation4 + $0x670] sm:$0xff] }
 0x1fc   :  { %v793_v6 = vpop.f32.mrb[6].mxu0  ;;  %2982 = vmatprep.subr.bf16.mxu1 %v2981_v2  ;;  %v1480_v2 = vld [vmem:[#allocation4 + $0x678] sm:$0xff] }
 0x1fd   :  { %v864_v14 = vpop.f32.mrb[6].mxu1  ;;  %v795_v7 = vpop.f32.mrb[7].mxu0  ;;  %v2967_v5 = vpack.c.bf16 %v1480_v2, %v1479_v1 }
 0x1fe   :  { %v938_v15 = vcombine.low %v793_v6, %v795_v7  ;;  %v866_v16 = vpop.f32.mrb[7].mxu1  ;;  %v2999_v6 = vpack.c.bf16 %v1512_v4, %v1511_v3 }
 0x1ff   :  { %v939_v18 = vcombine.low %v864_v14, %v866_v16 }
 0x200   :  { %v960_v21 = vrot.slane %v938_v15, %v3132_v57 }
 0x201   :  { %v967_v23 = vrot.slane %v939_v18, %v3132_v57 }
 0x202   :  { %2952 = vmatpush3.bf16.xpose.msra.mxu0 %v2951_v17 }
 0x203   :  { %v969_v24 = vcombine.low %v960_v21, %v967_v23  ;;  %2984 = vmatpush3.bf16.xpose.msra.mxu1 %v2983_v19  ;;  %2954 = vmatprep.subr.bf16.mxu0 %v2953_v20 }
 0x204   :  { %2986 = vmatprep.subr.bf16.mxu1 %v2985_v22 }
 0x205   :  { %v983_v32 = vrot.slane %v969_v24, %v3132_v57 }
 0x207   :  { %v984_v36 = vcombine.low %v976_v31, %v983_v32 }
 0x209   :  { %986 = vst [vmem:[%s3211_s4] ss:$2 sm:$0xff] %v984_v36 }
 0x20a   :  { %2956 = vmatpush3.bf16.xpose.msra.mxu0 %v2955_v35 }
 0x20b   :  { %2988 = vmatpush3.bf16.xpose.msra.mxu1 %v2987_v38  ;;  %2958 = vmatprep.subr.bf16.mxu0 %v2957_v41 }
 0x20c   :  { %2990 = vmatprep.subr.bf16.mxu1 %v2989_v42 }
 0x212   :  { %2960 = vmatpush3.bf16.xpose.msra.mxu0 %v2959_v48 }
 0x213   :  { %2992 = vmatpush3.bf16.xpose.msra.mxu1 %v2991_v49  ;;  %2962 = vmatprep.subr.bf16.mxu0 %v2961_v50 }
 0x214   :  { %2994 = vmatprep.subr.bf16.mxu1 %v2993_v51 }
 0x21a   :  { %2964 = vmatpush3.bf16.xpose.msra.mxu0 %v2963_v61 }
 0x21b   :  { %2996 = vmatpush3.bf16.xpose.msra.mxu1 %v2995_v62  ;;  %2966 = vmatprep.subr.bf16.mxu0 %v2965_v63 }
 0x21c   :  { %2998 = vmatprep.subr.bf16.mxu1 %v2997_v0 }
 0x222   :  { %2968 = vmatpush3.bf16.xpose.msra.mxu0 %v2967_v5 }
 0x223   :  { %3000 = vmatpush3.bf16.xpose.msra.mxu1 %v2999_v6 }
 0x229   :  { %2454 = vmatmul.mubr.f32.vlgmr.msra.gmra.mrb[14].mxu0 %v3145_v11 }
 0x22a   :  { %2488 = vmatmul.mubr.f32.vlgmr.msra.gmra.mrb[14].mxu1 %v3145_v11 }
 0x23c   :  { %v1182_v8 = vpop.f32.mrb[8].mxu0 }
 0x23d   :  { %v1253_v12 = vpop.f32.mrb[8].mxu1  ;;  %v1184_v13 = vpop.f32.mrb[9].mxu0 }
 0x23e   :  { %v1821_v14 = vcombine.low %v1182_v8, %v1184_v13  ;;  %v1255_v7 = vpop.f32.mrb[9].mxu1 }
 0x23f   :  { %v1822_v9 = vcombine.low %v1253_v12, %v1255_v7 }
 0x240   :  { %v1831_v10 = vrot.slane %v1821_v14, %v3132_v57 }
 0x241   :  { %v1838_v15 = vrot.slane %v1822_v9, %v3132_v57 }
 0x243   :  { %v1853_v16 = vcombine.high %v1831_v10, %v1838_v15 }
 0x245   :  { %v1861_v25 = vrot.slane %v1853_v16, %v3132_v57 }
 0x27c   :  { %v1324_v17 = vpop.f32.mrb[10].mxu0 }
 0x27d   :  { %v1395_v18 = vpop.f32.mrb[10].mxu1  ;;  %v1326_v19 = vpop.f32.mrb[11].mxu0 }
 0x27e   :  { %v1823_v20 = vcombine.low %v1324_v17, %v1326_v19  ;;  %v1397_v21 = vpop.f32.mrb[11].mxu1 }
 0x27f   :  { %v1824_v22 = vcombine.low %v1395_v18, %v1397_v21 }
 0x280   :  { %v1845_v23 = vrot.slane %v1823_v20, %v3132_v57 }
 0x281   :  { %v1852_v11 = vrot.slane %v1824_v22, %v3132_v57 }
 0x283   :  { %v1854_v24 = vcombine.high %v1845_v23, %v1852_v11 }
 0x285   :  { %v1868_v26 = vrot.slane %v1854_v24, %v3132_v57 }
 0x287   :  { %v1869_v27 = vcombine.low %v1861_v25, %v1868_v26 }
 0x289   :  { %1943 = vst [vmem:[%s3210_s3 + $0x1] ss:$2 sm:$0xff] %v1869_v27 }
 0x2bc   :  { %v1595_v28 = vpop.f32.mrb[12].mxu0 }
 0x2bd   :  { %v1666_v29 = vpop.f32.mrb[12].mxu1  ;;  %v1597_v30 = vpop.f32.mrb[13].mxu0 }
 0x2be   :  { %v1881_v31 = vcombine.low %v1595_v28, %v1597_v30  ;;  %v1668_v32 = vpop.f32.mrb[13].mxu1 }
 0x2bf   :  { %v1882_v33 = vcombine.low %v1666_v29, %v1668_v32 }
 0x2c0   :  { %v1891_v34 = vrot.slane %v1881_v31, %v3132_v57 }
 0x2c1   :  { %v1898_v35 = vrot.slane %v1882_v33, %v3132_v57 }
 0x2c3   :  { %v1913_v36 = vcombine.high %v1891_v34, %v1898_v35 }
 0x2c5   :  { %v1921_v47 = vrot.slane %v1913_v36, %v3132_v57 }
 0x2fc   :  { %v1737_v38 = vpop.f32.mrb[14].mxu0 }
 0x2fd   :  { %v1808_v41 = vpop.f32.mrb[14].mxu1  ;;  %v1739_v42 = vpop.f32.mrb[15].mxu0 }
 0x2fe   :  { %v1883_v43 = vcombine.low %v1737_v38, %v1739_v42  ;;  %v1810_v44 = vpop.f32.mrb[15].mxu1 }
 0x2ff   :  { %v1884_v37 = vcombine.low %v1808_v41, %v1810_v44 }
 0x300   :  { %v1905_v39 = vrot.slane %v1883_v43, %v3132_v57 }
 0x301   :  { %v1912_v40 = vrot.slane %v1884_v37, %v3132_v57 }
 0x303   :  { %v1914_v46 = vcombine.high %v1905_v39, %v1912_v40 }
 0x305   :  { %v1928_v45 = vrot.slane %v1914_v46, %v3132_v57 }
 0x307   :  { %v1929_v48 = vcombine.low %v1921_v47, %v1928_v45 }
 0x309   :  { %1944 = vst [vmem:[%s3211_s4 + $0x1] ss:$2 sm:$0xff] %v1929_v48 }
 0x30a   :  { %1941 = vsyncpa [#allocation3], 1 }
 0x30b   :  { %1942 = vsyncpa [#allocation5], 1 }

</bundles_post_ra>
